<compile_context>
chip_gen: v5e
topology: v5e:2x2
jax: 0.10.0
libtpu: 0.0.40
codegen_flags: <defaults>
</compile_context>

<pallas_src>
import functools
import math

import jax
import jax.numpy as jnp
from jax.experimental import pallas as pl
from jax.experimental.pallas import tpu as pltpu


def _round_up(x, m):
    return ((x + m - 1) // m) * m


# ---------------------------------------------------------------------------
# Fused kernel: mix-hop propagation + mlp3 (1x1 conv) contribution per channel.
# ---------------------------------------------------------------------------
def _fused_mixprop_kernel(a_ref, x_ref, w_ref, b_ref, o_ref, hs_ref, acc_ref,
                          *, order, gdep, alpha):
    """One (NL-tile, input-channel) grid step.

    a_ref  : (order, V, W) bf16   row-normalized adjacencies (shared)
    x_ref  : (1, W, TNL)          x tile of input channel ci (original dtype)
    w_ref  : (1, c_out, S) f32    mlp3 weights for channel ci (k = s*C + ci)
    b_ref  : (c_out, 1)    f32    mlp3 bias
    o_ref  : (V, c_out, TNL)      output tile (revisited across ci)
    hs_ref : (S, V, TNL)   f32    scratch: propagation slabs of this channel
    acc_ref: (V, c_out, TNL) f32  scratch: running mlp3 accumulator over channels
    """
    ci = pl.program_id(1)
    n_c = pl.num_programs(1)
    n_nodes = hs_ref.shape[1]

    @pl.when(ci == 0)
    def _():
        acc_ref[...] = jnp.zeros_like(acc_ref)

    # ---- mix-hop propagation for this channel (all order*gdep hops fused) ----
    x = x_ref[0].astype(jnp.float32)              # (W, TNL)
    ax = alpha * x                                # hoisted out of the hop loops
    beta = 1.0 - alpha
    hs_ref[0] = x                                 # slab 0 of the concat is x itself
    h = x
    s = 1
    for j in range(order):                        # static unroll (small)
        a = a_ref[j]                              # (V, W) bf16
        for _ in range(gdep):
            # h <- alpha*x + (1-alpha) * (A_hat @ h); bf16 MXU inputs, f32 accumulate.
            h = ax + beta * jnp.dot(a, h.astype(jnp.bfloat16),
                                    preferred_element_type=jnp.float32)
            hs_ref[s] = h                         # dense leading-dim store
            s += 1

    # ---- fused 1x1-conv (mlp3) contribution of this channel ----
    w = w_ref[0]                                  # (c_out, S) f32
    for v in range(n_nodes):                      # static unroll over nodes
        acc_ref[v] = acc_ref[v] + jnp.dot(w, hs_ref[:, v, :],
                                          preferred_element_type=jnp.float32)

    @pl.when(ci == n_c - 1)
    def _():
        bias = b_ref[...][None, :, :]             # (1, c_out, 1)
        o_ref[...] = (acc_ref[...] + bias).astype(o_ref.dtype)


# ---------------------------------------------------------------------------
# Forward pass (matches mixprop01.forward semantics).
# ---------------------------------------------------------------------------
def mixprop01_forward(x, adj, w3, b3, *, gdep, order, alpha, tile_nl=1024):
    N, C, W, L = x.shape
    G, V, W2 = adj.shape
    assert V == W2 == W, "adjacency must be (order, V, V) with V == x.shape[2]"
    assert G == order, "number of adjacency matrices must equal `order`"
    S = order * gdep + 1
    c_out, K = w3.shape
    assert K == S * C, "mlp3 weight must have (gdep*order+1)*c_in input channels"

    f32 = jnp.float32

    # Adjacency normalization a_i = (adj_i + I) / rowsum : tiny O(order*V^2), kept in XLA.
    a_norm = adj.astype(f32) + jnp.eye(V, dtype=f32)[None]
    a_norm = a_norm / jnp.sum(a_norm, axis=-1, keepdims=True)       # (order, V, W)
    a_bf16 = a_norm.astype(jnp.bfloat16)                            # bf16 MXU input

    # Layout plumbing: nodes on sublanes, (batch*seq)=NL on lanes (lane-dense big axis).
    NL = N * L
    xt = jnp.transpose(x, (1, 2, 0, 3)).reshape(C, W, NL)           # keep original dtype

    # mlp3 weight per input channel: wt[c, o, s] = w3[o, s*C + c]  (torch.cat order)
    wt = jnp.transpose(w3.astype(f32).reshape(c_out, S, C), (2, 0, 1))   # (C, c_out, S)
    b3c = b3.astype(f32).reshape(c_out, 1)

    x_bytes = jnp.dtype(x.dtype).itemsize
    o_bytes = x_bytes

    # Tile the NL axis; shrink until everything fits ~40 MiB (safe on v7x's 64 MiB VMEM).
    TNL = min(_round_up(int(tile_nl), 128), _round_up(NL, 128))

    def vmem_est(tnl):
        blocks = (2 * order * V * W            # bf16 adjacency
                  + x_bytes * W * tnl          # x tile
                  + 4 * c_out * S              # per-channel weights
                  + o_bytes * V * c_out * tnl  # output tile
                  + 4 * c_out)                 # bias
        scratch = 4 * (S * V * tnl + V * c_out * tnl)
        return 2 * blocks + scratch + (1 << 20)

    while vmem_est(TNL) > 40 * (1 << 20) and TNL > 128:
        TNL //= 2
    n_t = pl.cdiv(NL, TNL)
    vmem_limit = int(min(60 * (1 << 20), max(32 * (1 << 20), 2 * vmem_est(TNL))))

    fused = pl.pallas_call(
        functools.partial(_fused_mixprop_kernel, order=order, gdep=gdep,
                          alpha=float(alpha)),
        out_shape=jax.ShapeDtypeStruct((V, c_out, NL), x.dtype),
        grid_spec=pltpu.PrefetchScalarGridSpec(
            num_scalar_prefetch=0,
            grid=(n_t, C),                      # NL tiles "parallel", channels reduced
            in_specs=[
                pl.BlockSpec((order, V, W), lambda ti, ci: (0, 0, 0)),
                pl.BlockSpec((1, W, TNL), lambda ti, ci: (ci, 0, ti)),
                pl.BlockSpec((1, c_out, S), lambda ti, ci: (ci, 0, 0)),
                pl.BlockSpec((c_out, 1), lambda ti, ci: (0, 0)),
            ],
            out_specs=pl.BlockSpec((V, c_out, TNL), lambda ti, ci: (0, 0, ti)),
            scratch_shapes=[
                pltpu.VMEM((S, V, TNL), f32),        # per-channel propagation slabs
                pltpu.VMEM((V, c_out, TNL), f32),    # resident f32 accumulator
            ],
        ),
        compiler_params=pltpu.CompilerParams(
            dimension_semantics=("parallel", "arbitrary"),
            vmem_limit_bytes=vmem_limit,
        ),
        cost_estimate=pl.CostEstimate(
            flops=2 * C * NL * V * (order * gdep * W + c_out * S),
            transcendentals=0,
            bytes_accessed=(x_bytes * C * W * NL + o_bytes * V * c_out * NL
                            + C * (2 * order * V * W + 4 * c_out * S)),
        ),
    )
    out = fused(a_bf16, xt, wt, b3c)                               # (V, c_out, NL)

    # Back to the PyTorch (N, c_out, V, L) layout (small output transpose).
    out = jnp.transpose(out.reshape(V, c_out, N, L), (2, 1, 0, 3))
    return out


# ---------------------------------------------------------------------------
# Module port.
# ---------------------------------------------------------------------------
class MixProp01:
    """JAX/Pallas port of the PyTorch mixprop01 module (forward pass)."""

    def __init__(self, c_in, c_out, gdep, order, dropout, alpha, key=None):
        self.c_in, self.c_out = c_in, c_out
        self.gdep, self.order = gdep, order
        self.dropout, self.alpha = dropout, alpha   # dropout unused in forward (as in PyTorch)
        if key is None:
            key = jax.random.PRNGKey(0)
        k1, k2, k3, k4 = jax.random.split(key, 4)
        # mlp3: Conv2d((gdep*order+1)*c_in, c_out, 1x1) -> weight (c_out, K), bias (c_out,)
        k_mlp3 = (gdep * order + 1) * c_in
        b3 = 1.0 / math.sqrt(k_mlp3)
        self.w_mlp3 = jax.random.uniform(k1, (c_out, k_mlp3), jnp.float32, -b3, b3)
        self.b_mlp3 = jax.random.uniform(k2, (c_out,), jnp.float32, -b3, b3)
        # self.mlp exists in the PyTorch __init__ but is never used in forward();
        # created here only for parameter-structure fidelity.
        k_mlp = (gdep + 1) * c_in
        b1 = 1.0 / math.sqrt(k_mlp)
        self.w_mlp = jax.random.uniform(k3, (c_out, k_mlp), jnp.float32, -b1, b1)
        self.b_mlp = jax.random.uniform(k4, (c_out,), jnp.float32, -b1, b1)

    def __call__(self, x, adj):
        return mixprop01_forward(x, adj, self.w_mlp3, self.b_mlp3,
                                 gdep=self.gdep, order=self.order, alpha=self.alpha)


# ---------------------------------------------------------------------------
# Pure-JAX reference (mirrors the PyTorch forward exactly, f32 throughout).
# ---------------------------------------------------------------------------
def _mixprop_reference(x, adj, w3, b3, gdep, order, alpha):
    G, V, _ = adj.shape
    eye = jnp.eye(V, dtype=x.dtype)
    h = x
    outs = [x]
    for j in range(G):
        a = adj[j] + eye
        a = a / jnp.sum(a, axis=1, keepdims=True)
        for _ in range(gdep):
            h = alpha * x + (1.0 - alpha) * jnp.einsum("ncwl,vw->ncvl", h, a)
            outs.append(h)
    ho = jnp.concatenate(outs, axis=1)
    return jnp.einsum("nkvl,ok->novl", ho, w3) + b3[None, :, None, None]


if __name__ == "__main__":
    key = jax.random.PRNGKey(0)
    kx, ka, kp = jax.random.split(key, 3)

    # x: (N, C_in, V=num_nodes, L=seq), adj: (order, V, V)
    N, C_IN, V, L = 2, 4, 16, 8
    GDEP, ORDER = 2, 2
    C_OUT = 8
    ALPHA = 0.05
    DROPOUT = 0.3   # stored but unused in forward (matches the PyTorch module)

    x = jax.random.normal(kx, (N, C_IN, V, L), dtype=jnp.float32)
    adj = jax.random.uniform(ka, (ORDER, V, V), dtype=jnp.float32)

    model = MixProp01(C_IN, C_OUT, GDEP, ORDER, DROPOUT, ALPHA, key=kp)
    fwd = jax.jit(model.__call__)
    out = jax.block_until_ready(fwd(x, adj))

    ref = _mixprop_reference(x, adj, model.w_mlp3, model.b_mlp3, GDEP, ORDER, ALPHA)
    assert out.shape == (N, C_OUT, V, L), out.shape
    max_err = float(jnp.max(jnp.abs(out - ref)))
    # Tolerance covers the bf16 MXU inputs in the propagation hops vs the f32 reference.
    assert jnp.allclose(out, ref, atol=2e-2, rtol=2e-2), f"max abs err = {max_err}"
    print("KERNEL_OK")
</pallas_src>

<mosaic_0001>
module attributes {stable_mosaic.version = 11 : i64} {
  func.func @_fused_mixprop_kernel(%arg0: i32, %arg1: i32, %arg2: memref<2x16x16xbf16, #tpu.memory_space<vmem>>, %arg3: memref<1x16x128xf32, #tpu.memory_space<vmem>>, %arg4: memref<1x8x5xf32, #tpu.memory_space<vmem>>, %arg5: memref<8x1xf32, #tpu.memory_space<vmem>>, %arg6: memref<16x8x128xf32, #tpu.memory_space<vmem>>, %arg7: memref<5x16x128xf32, #tpu.memory_space<vmem>>, %arg8: memref<16x8x128xf32, #tpu.memory_space<vmem>>) attributes {dimension_semantics = [#tpu.dimension_semantics<parallel>, #tpu.dimension_semantics<arbitrary>], iteration_bounds = array<i64: 1, 4>, scalar_prefetch = 0 : i64, scratch_operands = 2 : i64, tpu.core_type = #tpu.core_type<tc>, window_params = [{pipeline_mode = #tpu.pipeline_mode<synchronous>, transform_indices = @transform_0, window_bounds = array<i64: 2, 16, 16>}, {transform_indices = @transform_1, window_bounds = array<i64: 1, 16, 128>}, {transform_indices = @transform_2, window_bounds = array<i64: 1, 8, 5>}, {pipeline_mode = #tpu.pipeline_mode<synchronous>, transform_indices = @transform_3, window_bounds = array<i64: 8, 1>}, {transform_indices = @transform_4, window_bounds = array<i64: 16, 8, 128>}]} {
    %c0_i32 = arith.constant 0 : i32
    %0 = arith.cmpi eq, %arg1, %c0_i32 : i32
    %1 = arith.extui %0 : i1 to i32
    %c0_i32_0 = arith.constant 0 : i32
    %2 = arith.cmpi ne, %1, %c0_i32_0 : i32
    scf.if %2 {
      %cst_181 = arith.constant 0.000000e+00 : f32
      %195 = vector.broadcast %cst_181 : f32 to vector<16x8x128xf32>
      %c0_182 = arith.constant 0 : index
      %c0_183 = arith.constant 0 : index
      %c0_184 = arith.constant 0 : index
      %196 = vector.load %arg8[%c0_182, %c0_183, %c0_184] : memref<16x8x128xf32, #tpu.memory_space<vmem>>, vector<16x8x128xf32>
      tpu.vector_store %arg8[%c0_182, %c0_183, %c0_184], %195 {strides = array<i32>} : memref<16x8x128xf32, #tpu.memory_space<vmem>>, vector<16x8x128xf32>,
    } else {
    }
    %c0 = arith.constant 0 : index
    %c0_1 = arith.constant 0 : index
    %c0_2 = arith.constant 0 : index
    %3 = vector.load %arg3[%c0, %c0_1, %c0_2] : memref<1x16x128xf32, #tpu.memory_space<vmem>>, vector<1x16x128xf32>
    %4 = vector.shape_cast %3 : vector<1x16x128xf32> to vector<16x128xf32>
    %cst = arith.constant 5.000000e-02 : f32
    %5 = vector.broadcast %cst : f32 to vector<16x128xf32>
    %6 = arith.mulf %5, %4 : vector<16x128xf32>
    %c0_3 = arith.constant 0 : index
    %c0_4 = arith.constant 0 : index
    %c0_5 = arith.constant 0 : index
    %7 = vector.load %arg7[%c0_3, %c0_4, %c0_5] : memref<5x16x128xf32, #tpu.memory_space<vmem>>, vector<1x16x128xf32>
    %8 = vector.shape_cast %7 : vector<1x16x128xf32> to vector<16x128xf32>
    %9 = vector.shape_cast %4 : vector<16x128xf32> to vector<1x16x128xf32>
    tpu.vector_store %arg7[%c0_3, %c0_4, %c0_5], %9 {strides = array<i32>} : memref<5x16x128xf32, #tpu.memory_space<vmem>>, vector<1x16x128xf32>,
    %c0_6 = arith.constant 0 : index
    %c0_7 = arith.constant 0 : index
    %c0_8 = arith.constant 0 : index
    %10 = vector.load %arg2[%c0_6, %c0_7, %c0_8] : memref<2x16x16xbf16, #tpu.memory_space<vmem>>, vector<1x16x16xbf16>
    %11 = vector.shape_cast %10 : vector<1x16x16xbf16> to vector<16x16xbf16>
    %12 = arith.truncf %4 : vector<16x128xf32> to vector<16x128xbf16>
    %cst_9 = arith.constant dense<0.000000e+00> : vector<16x128xf32>
    %13 = tpu.matmul %11, %12, %cst_9 {dimension_numbers = #tpu.dot_dimension_numbers<[1], [0], [0], [1], [0, 0, 1, 1], [], []>} : vector<16x16xbf16>, vector<16x128xbf16>, vector<16x128xf32> -> vector<16x128xf32>
    %cst_10 = arith.constant 0.949999988 : f32
    %14 = vector.broadcast %cst_10 : f32 to vector<16x128xf32>
    %15 = arith.mulf %14, %13 : vector<16x128xf32>
    %16 = arith.addf %6, %15 : vector<16x128xf32>
    %c1 = arith.constant 1 : index
    %c0_11 = arith.constant 0 : index
    %c0_12 = arith.constant 0 : index
    %17 = vector.load %arg7[%c1, %c0_11, %c0_12] : memref<5x16x128xf32, #tpu.memory_space<vmem>>, vector<1x16x128xf32>
    %18 = vector.shape_cast %17 : vector<1x16x128xf32> to vector<16x128xf32>
    %19 = vector.shape_cast %16 : vector<16x128xf32> to vector<1x16x128xf32>
    tpu.vector_store %arg7[%c1, %c0_11, %c0_12], %19 {strides = array<i32>} : memref<5x16x128xf32, #tpu.memory_space<vmem>>, vector<1x16x128xf32>,
    %20 = arith.truncf %16 : vector<16x128xf32> to vector<16x128xbf16>
    %cst_13 = arith.constant dense<0.000000e+00> : vector<16x128xf32>
    %21 = tpu.matmul %11, %20, %cst_13 {dimension_numbers = #tpu.dot_dimension_numbers<[1], [0], [0], [1], [0, 0, 1, 1], [], []>} : vector<16x16xbf16>, vector<16x128xbf16>, vector<16x128xf32> -> vector<16x128xf32>
    %cst_14 = arith.constant 0.949999988 : f32
    %22 = vector.broadcast %cst_14 : f32 to vector<16x128xf32>
    %23 = arith.mulf %22, %21 : vector<16x128xf32>
    %24 = arith.addf %6, %23 : vector<16x128xf32>
    %c2 = arith.constant 2 : index
    %c0_15 = arith.constant 0 : index
    %c0_16 = arith.constant 0 : index
    %25 = vector.load %arg7[%c2, %c0_15, %c0_16] : memref<5x16x128xf32, #tpu.memory_space<vmem>>, vector<1x16x128xf32>
    %26 = vector.shape_cast %25 : vector<1x16x128xf32> to vector<16x128xf32>
    %27 = vector.shape_cast %24 : vector<16x128xf32> to vector<1x16x128xf32>
    tpu.vector_store %arg7[%c2, %c0_15, %c0_16], %27 {strides = array<i32>} : memref<5x16x128xf32, #tpu.memory_space<vmem>>, vector<1x16x128xf32>,
    %c1_17 = arith.constant 1 : index
    %c0_18 = arith.constant 0 : index
    %c0_19 = arith.constant 0 : index
    %28 = vector.load %arg2[%c1_17, %c0_18, %c0_19] : memref<2x16x16xbf16, #tpu.memory_space<vmem>>, vector<1x16x16xbf16>
    %29 = vector.shape_cast %28 : vector<1x16x16xbf16> to vector<16x16xbf16>
    %30 = arith.truncf %24 : vector<16x128xf32> to vector<16x128xbf16>
    %cst_20 = arith.constant dense<0.000000e+00> : vector<16x128xf32>
    %31 = tpu.matmul %29, %30, %cst_20 {dimension_numbers = #tpu.dot_dimension_numbers<[1], [0], [0], [1], [0, 0, 1, 1], [], []>} : vector<16x16xbf16>, vector<16x128xbf16>, vector<16x128xf32> -> vector<16x128xf32>
    %cst_21 = arith.constant 0.949999988 : f32
    %32 = vector.broadcast %cst_21 : f32 to vector<16x128xf32>
    %33 = arith.mulf %32, %31 : vector<16x128xf32>
    %34 = arith.addf %6, %33 : vector<16x128xf32>
    %c3 = arith.constant 3 : index
    %c0_22 = arith.constant 0 : index
    %c0_23 = arith.constant 0 : index
    %35 = vector.load %arg7[%c3, %c0_22, %c0_23] : memref<5x16x128xf32, #tpu.memory_space<vmem>>, vector<1x16x128xf32>
    %36 = vector.shape_cast %35 : vector<1x16x128xf32> to vector<16x128xf32>
    %37 = vector.shape_cast %34 : vector<16x128xf32> to vector<1x16x128xf32>
    tpu.vector_store %arg7[%c3, %c0_22, %c0_23], %37 {strides = array<i32>} : memref<5x16x128xf32, #tpu.memory_space<vmem>>, vector<1x16x128xf32>,
    %38 = arith.truncf %34 : vector<16x128xf32> to vector<16x128xbf16>
    %cst_24 = arith.constant dense<0.000000e+00> : vector<16x128xf32>
    %39 = tpu.matmul %29, %38, %cst_24 {dimension_numbers = #tpu.dot_dimension_numbers<[1], [0], [0], [1], [0, 0, 1, 1], [], []>} : vector<16x16xbf16>, vector<16x128xbf16>, vector<16x128xf32> -> vector<16x128xf32>
    %cst_25 = arith.constant 0.949999988 : f32
    %40 = vector.broadcast %cst_25 : f32 to vector<16x128xf32>
    %41 = arith.mulf %40, %39 : vector<16x128xf32>
    %42 = arith.addf %6, %41 : vector<16x128xf32>
    %c4 = arith.constant 4 : index
    %c0_26 = arith.constant 0 : index
    %c0_27 = arith.constant 0 : index
    %43 = vector.load %arg7[%c4, %c0_26, %c0_27] : memref<5x16x128xf32, #tpu.memory_space<vmem>>, vector<1x16x128xf32>
    %44 = vector.shape_cast %43 : vector<1x16x128xf32> to vector<16x128xf32>
    %45 = vector.shape_cast %42 : vector<16x128xf32> to vector<1x16x128xf32>
    tpu.vector_store %arg7[%c4, %c0_26, %c0_27], %45 {strides = array<i32>} : memref<5x16x128xf32, #tpu.memory_space<vmem>>, vector<1x16x128xf32>,
    %c0_28 = arith.constant 0 : index
    %c0_29 = arith.constant 0 : index
    %c0_30 = arith.constant 0 : index
    %46 = vector.load %arg4[%c0_28, %c0_29, %c0_30] : memref<1x8x5xf32, #tpu.memory_space<vmem>>, vector<1x8x5xf32>
    %47 = vector.shape_cast %46 : vector<1x8x5xf32> to vector<8x5xf32>
    %c0_31 = arith.constant 0 : index
    %c0_32 = arith.constant 0 : index
    %c0_33 = arith.constant 0 : index
    %48 = vector.load %arg8[%c0_31, %c0_32, %c0_33] : memref<16x8x128xf32, #tpu.memory_space<vmem>>, vector<1x8x128xf32>
    %49 = vector.shape_cast %48 : vector<1x8x128xf32> to vector<8x128xf32>
    %c0_34 = arith.constant 0 : index
    %c0_35 = arith.constant 0 : index
    %c0_36 = arith.constant 0 : index
    %50 = vector.load %arg7[%c0_34, %c0_35, %c0_36] : memref<5x16x128xf32, #tpu.memory_space<vmem>>, vector<5x1x128xf32>
    %51 = vector.shape_cast %50 : vector<5x1x128xf32> to vector<5x128xf32>
    %cst_37 = arith.constant dense<0.000000e+00> : vector<8x128xf32>
    %52 = tpu.matmul %47, %51, %cst_37 {dimension_numbers = #tpu.dot_dimension_numbers<[1], [0], [0], [1], [0, 0, 1, 1], [], []>} : vector<8x5xf32>, vector<5x128xf32>, vector<8x128xf32> -> vector<8x128xf32>
    %53 = arith.addf %49, %52 : vector<8x128xf32>
    %c0_38 = arith.constant 0 : index
    %c0_39 = arith.constant 0 : index
    %c0_40 = arith.constant 0 : index
    %54 = vector.load %arg8[%c0_38, %c0_39, %c0_40] : memref<16x8x128xf32, #tpu.memory_space<vmem>>, vector<1x8x128xf32>
    %55 = vector.shape_cast %54 : vector<1x8x128xf32> to vector<8x128xf32>
    %56 = vector.shape_cast %53 : vector<8x128xf32> to vector<1x8x128xf32>
    tpu.vector_store %arg8[%c0_38, %c0_39, %c0_40], %56 {strides = array<i32>} : memref<16x8x128xf32, #tpu.memory_space<vmem>>, vector<1x8x128xf32>,
    %c1_41 = arith.constant 1 : index
    %c0_42 = arith.constant 0 : index
    %c0_43 = arith.constant 0 : index
    %57 = vector.load %arg8[%c1_41, %c0_42, %c0_43] : memref<16x8x128xf32, #tpu.memory_space<vmem>>, vector<1x8x128xf32>
    %58 = vector.shape_cast %57 : vector<1x8x128xf32> to vector<8x128xf32>
    %c0_44 = arith.constant 0 : index
    %c1_45 = arith.constant 1 : index
    %c0_46 = arith.constant 0 : index
    %59 = vector.load %arg7[%c0_44, %c1_45, %c0_46] : memref<5x16x128xf32, #tpu.memory_space<vmem>>, vector<5x1x128xf32>
    %60 = vector.shape_cast %59 : vector<5x1x128xf32> to vector<5x128xf32>
    %cst_47 = arith.constant dense<0.000000e+00> : vector<8x128xf32>
    %61 = tpu.matmul %47, %60, %cst_47 {dimension_numbers = #tpu.dot_dimension_numbers<[1], [0], [0], [1], [0, 0, 1, 1], [], []>} : vector<8x5xf32>, vector<5x128xf32>, vector<8x128xf32> -> vector<8x128xf32>
    %62 = arith.addf %58, %61 : vector<8x128xf32>
    %c1_48 = arith.constant 1 : index
    %c0_49 = arith.constant 0 : index
    %c0_50 = arith.constant 0 : index
    %63 = vector.load %arg8[%c1_48, %c0_49, %c0_50] : memref<16x8x128xf32, #tpu.memory_space<vmem>>, vector<1x8x128xf32>
    %64 = vector.shape_cast %63 : vector<1x8x128xf32> to vector<8x128xf32>
    %65 = vector.shape_cast %62 : vector<8x128xf32> to vector<1x8x128xf32>
    tpu.vector_store %arg8[%c1_48, %c0_49, %c0_50], %65 {strides = array<i32>} : memref<16x8x128xf32, #tpu.memory_space<vmem>>, vector<1x8x128xf32>,
    %c2_51 = arith.constant 2 : index
    %c0_52 = arith.constant 0 : index
    %c0_53 = arith.constant 0 : index
    %66 = vector.load %arg8[%c2_51, %c0_52, %c0_53] : memref<16x8x128xf32, #tpu.memory_space<vmem>>, vector<1x8x128xf32>
    %67 = vector.shape_cast %66 : vector<1x8x128xf32> to vector<8x128xf32>
    %c0_54 = arith.constant 0 : index
    %c2_55 = arith.constant 2 : index
    %c0_56 = arith.constant 0 : index
    %68 = vector.load %arg7[%c0_54, %c2_55, %c0_56] : memref<5x16x128xf32, #tpu.memory_space<vmem>>, vector<5x1x128xf32>
    %69 = vector.shape_cast %68 : vector<5x1x128xf32> to vector<5x128xf32>
    %cst_57 = arith.constant dense<0.000000e+00> : vector<8x128xf32>
    %70 = tpu.matmul %47, %69, %cst_57 {dimension_numbers = #tpu.dot_dimension_numbers<[1], [0], [0], [1], [0, 0, 1, 1], [], []>} : vector<8x5xf32>, vector<5x128xf32>, vector<8x128xf32> -> vector<8x128xf32>
    %71 = arith.addf %67, %70 : vector<8x128xf32>
    %c2_58 = arith.constant 2 : index
    %c0_59 = arith.constant 0 : index
    %c0_60 = arith.constant 0 : index
    %72 = vector.load %arg8[%c2_58, %c0_59, %c0_60] : memref<16x8x128xf32, #tpu.memory_space<vmem>>, vector<1x8x128xf32>
    %73 = vector.shape_cast %72 : vector<1x8x128xf32> to vector<8x128xf32>
    %74 = vector.shape_cast %71 : vector<8x128xf32> to vector<1x8x128xf32>
    tpu.vector_store %arg8[%c2_58, %c0_59, %c0_60], %74 {strides = array<i32>} : memref<16x8x128xf32, #tpu.memory_space<vmem>>, vector<1x8x128xf32>,
    %c3_61 = arith.constant 3 : index
    %c0_62 = arith.constant 0 : index
    %c0_63 = arith.constant 0 : index
    %75 = vector.load %arg8[%c3_61, %c0_62, %c0_63] : memref<16x8x128xf32, #tpu.memory_space<vmem>>, vector<1x8x128xf32>
    %76 = vector.shape_cast %75 : vector<1x8x128xf32> to vector<8x128xf32>
    %c0_64 = arith.constant 0 : index
    %c3_65 = arith.constant 3 : index
    %c0_66 = arith.constant 0 : index
    %77 = vector.load %arg7[%c0_64, %c3_65, %c0_66] : memref<5x16x128xf32, #tpu.memory_space<vmem>>, vector<5x1x128xf32>
    %78 = vector.shape_cast %77 : vector<5x1x128xf32> to vector<5x128xf32>
    %cst_67 = arith.constant dense<0.000000e+00> : vector<8x128xf32>
    %79 = tpu.matmul %47, %78, %cst_67 {dimension_numbers = #tpu.dot_dimension_numbers<[1], [0], [0], [1], [0, 0, 1, 1], [], []>} : vector<8x5xf32>, vector<5x128xf32>, vector<8x128xf32> -> vector<8x128xf32>
    %80 = arith.addf %76, %79 : vector<8x128xf32>
    %c3_68 = arith.constant 3 : index
    %c0_69 = arith.constant 0 : index
    %c0_70 = arith.constant 0 : index
    %81 = vector.load %arg8[%c3_68, %c0_69, %c0_70] : memref<16x8x128xf32, #tpu.memory_space<vmem>>, vector<1x8x128xf32>
    %82 = vector.shape_cast %81 : vector<1x8x128xf32> to vector<8x128xf32>
    %83 = vector.shape_cast %80 : vector<8x128xf32> to vector<1x8x128xf32>
    tpu.vector_store %arg8[%c3_68, %c0_69, %c0_70], %83 {strides = array<i32>} : memref<16x8x128xf32, #tpu.memory_space<vmem>>, vector<1x8x128xf32>,
    %c4_71 = arith.constant 4 : index
    %c0_72 = arith.constant 0 : index
    %c0_73 = arith.constant 0 : index
    %84 = vector.load %arg8[%c4_71, %c0_72, %c0_73] : memref<16x8x128xf32, #tpu.memory_space<vmem>>, vector<1x8x128xf32>
    %85 = vector.shape_cast %84 : vector<1x8x128xf32> to vector<8x128xf32>
    %c0_74 = arith.constant 0 : index
    %c4_75 = arith.constant 4 : index
    %c0_76 = arith.constant 0 : index
    %86 = vector.load %arg7[%c0_74, %c4_75, %c0_76] : memref<5x16x128xf32, #tpu.memory_space<vmem>>, vector<5x1x128xf32>
    %87 = vector.shape_cast %86 : vector<5x1x128xf32> to vector<5x128xf32>
    %cst_77 = arith.constant dense<0.000000e+00> : vector<8x128xf32>
    %88 = tpu.matmul %47, %87, %cst_77 {dimension_numbers = #tpu.dot_dimension_numbers<[1], [0], [0], [1], [0, 0, 1, 1], [], []>} : vector<8x5xf32>, vector<5x128xf32>, vector<8x128xf32> -> vector<8x128xf32>
    %89 = arith.addf %85, %88 : vector<8x128xf32>
    %c4_78 = arith.constant 4 : index
    %c0_79 = arith.constant 0 : index
    %c0_80 = arith.constant 0 : index
    %90 = vector.load %arg8[%c4_78, %c0_79, %c0_80] : memref<16x8x128xf32, #tpu.memory_space<vmem>>, vector<1x8x128xf32>
    %91 = vector.shape_cast %90 : vector<1x8x128xf32> to vector<8x128xf32>
    %92 = vector.shape_cast %89 : vector<8x128xf32> to vector<1x8x128xf32>
    tpu.vector_store %arg8[%c4_78, %c0_79, %c0_80], %92 {strides = array<i32>} : memref<16x8x128xf32, #tpu.memory_space<vmem>>, vector<1x8x128xf32>,
    %c5 = arith.constant 5 : index
    %c0_81 = arith.constant 0 : index
    %c0_82 = arith.constant 0 : index
    %93 = vector.load %arg8[%c5, %c0_81, %c0_82] : memref<16x8x128xf32, #tpu.memory_space<vmem>>, vector<1x8x128xf32>
    %94 = vector.shape_cast %93 : vector<1x8x128xf32> to vector<8x128xf32>
    %c0_83 = arith.constant 0 : index
    %c5_84 = arith.constant 5 : index
    %c0_85 = arith.constant 0 : index
    %95 = vector.load %arg7[%c0_83, %c5_84, %c0_85] : memref<5x16x128xf32, #tpu.memory_space<vmem>>, vector<5x1x128xf32>
    %96 = vector.shape_cast %95 : vector<5x1x128xf32> to vector<5x128xf32>
    %cst_86 = arith.constant dense<0.000000e+00> : vector<8x128xf32>
    %97 = tpu.matmul %47, %96, %cst_86 {dimension_numbers = #tpu.dot_dimension_numbers<[1], [0], [0], [1], [0, 0, 1, 1], [], []>} : vector<8x5xf32>, vector<5x128xf32>, vector<8x128xf32> -> vector<8x128xf32>
    %98 = arith.addf %94, %97 : vector<8x128xf32>
    %c5_87 = arith.constant 5 : index
    %c0_88 = arith.constant 0 : index
    %c0_89 = arith.constant 0 : index
    %99 = vector.load %arg8[%c5_87, %c0_88, %c0_89] : memref<16x8x128xf32, #tpu.memory_space<vmem>>, vector<1x8x128xf32>
    %100 = vector.shape_cast %99 : vector<1x8x128xf32> to vector<8x128xf32>
    %101 = vector.shape_cast %98 : vector<8x128xf32> to vector<1x8x128xf32>
    tpu.vector_store %arg8[%c5_87, %c0_88, %c0_89], %101 {strides = array<i32>} : memref<16x8x128xf32, #tpu.memory_space<vmem>>, vector<1x8x128xf32>,
    %c6 = arith.constant 6 : index
    %c0_90 = arith.constant 0 : index
    %c0_91 = arith.constant 0 : index
    %102 = vector.load %arg8[%c6, %c0_90, %c0_91] : memref<16x8x128xf32, #tpu.memory_space<vmem>>, vector<1x8x128xf32>
    %103 = vector.shape_cast %102 : vector<1x8x128xf32> to vector<8x128xf32>
    %c0_92 = arith.constant 0 : index
    %c6_93 = arith.constant 6 : index
    %c0_94 = arith.constant 0 : index
    %104 = vector.load %arg7[%c0_92, %c6_93, %c0_94] : memref<5x16x128xf32, #tpu.memory_space<vmem>>, vector<5x1x128xf32>
    %105 = vector.shape_cast %104 : vector<5x1x128xf32> to vector<5x128xf32>
    %cst_95 = arith.constant dense<0.000000e+00> : vector<8x128xf32>
    %106 = tpu.matmul %47, %105, %cst_95 {dimension_numbers = #tpu.dot_dimension_numbers<[1], [0], [0], [1], [0, 0, 1, 1], [], []>} : vector<8x5xf32>, vector<5x128xf32>, vector<8x128xf32> -> vector<8x128xf32>
    %107 = arith.addf %103, %106 : vector<8x128xf32>
    %c6_96 = arith.constant 6 : index
    %c0_97 = arith.constant 0 : index
    %c0_98 = arith.constant 0 : index
    %108 = vector.load %arg8[%c6_96, %c0_97, %c0_98] : memref<16x8x128xf32, #tpu.memory_space<vmem>>, vector<1x8x128xf32>
    %109 = vector.shape_cast %108 : vector<1x8x128xf32> to vector<8x128xf32>
    %110 = vector.shape_cast %107 : vector<8x128xf32> to vector<1x8x128xf32>
    tpu.vector_store %arg8[%c6_96, %c0_97, %c0_98], %110 {strides = array<i32>} : memref<16x8x128xf32, #tpu.memory_space<vmem>>, vector<1x8x128xf32>,
    %c7 = arith.constant 7 : index
    %c0_99 = arith.constant 0 : index
    %c0_100 = arith.constant 0 : index
    %111 = vector.load %arg8[%c7, %c0_99, %c0_100] : memref<16x8x128xf32, #tpu.memory_space<vmem>>, vector<1x8x128xf32>
    %112 = vector.shape_cast %111 : vector<1x8x128xf32> to vector<8x128xf32>
    %c0_101 = arith.constant 0 : index
    %c7_102 = arith.constant 7 : index
    %c0_103 = arith.constant 0 : index
    %113 = vector.load %arg7[%c0_101, %c7_102, %c0_103] : memref<5x16x128xf32, #tpu.memory_space<vmem>>, vector<5x1x128xf32>
    %114 = vector.shape_cast %113 : vector<5x1x128xf32> to vector<5x128xf32>
    %cst_104 = arith.constant dense<0.000000e+00> : vector<8x128xf32>
    %115 = tpu.matmul %47, %114, %cst_104 {dimension_numbers = #tpu.dot_dimension_numbers<[1], [0], [0], [1], [0, 0, 1, 1], [], []>} : vector<8x5xf32>, vector<5x128xf32>, vector<8x128xf32> -> vector<8x128xf32>
    %116 = arith.addf %112, %115 : vector<8x128xf32>
    %c7_105 = arith.constant 7 : index
    %c0_106 = arith.constant 0 : index
    %c0_107 = arith.constant 0 : index
    %117 = vector.load %arg8[%c7_105, %c0_106, %c0_107] : memref<16x8x128xf32, #tpu.memory_space<vmem>>, vector<1x8x128xf32>
    %118 = vector.shape_cast %117 : vector<1x8x128xf32> to vector<8x128xf32>
    %119 = vector.shape_cast %116 : vector<8x128xf32> to vector<1x8x128xf32>
    tpu.vector_store %arg8[%c7_105, %c0_106, %c0_107], %119 {strides = array<i32>} : memref<16x8x128xf32, #tpu.memory_space<vmem>>, vector<1x8x128xf32>,
    %c8 = arith.constant 8 : index
    %c0_108 = arith.constant 0 : index
    %c0_109 = arith.constant 0 : index
    %120 = vector.load %arg8[%c8, %c0_108, %c0_109] : memref<16x8x128xf32, #tpu.memory_space<vmem>>, vector<1x8x128xf32>
    %121 = vector.shape_cast %120 : vector<1x8x128xf32> to vector<8x128xf32>
    %c0_110 = arith.constant 0 : index
    %c8_111 = arith.constant 8 : index
    %c0_112 = arith.constant 0 : index
    %122 = vector.load %arg7[%c0_110, %c8_111, %c0_112] : memref<5x16x128xf32, #tpu.memory_space<vmem>>, vector<5x1x128xf32>
    %123 = vector.shape_cast %122 : vector<5x1x128xf32> to vector<5x128xf32>
    %cst_113 = arith.constant dense<0.000000e+00> : vector<8x128xf32>
    %124 = tpu.matmul %47, %123, %cst_113 {dimension_numbers = #tpu.dot_dimension_numbers<[1], [0], [0], [1], [0, 0, 1, 1], [], []>} : vector<8x5xf32>, vector<5x128xf32>, vector<8x128xf32> -> vector<8x128xf32>
    %125 = arith.addf %121, %124 : vector<8x128xf32>
    %c8_114 = arith.constant 8 : index
    %c0_115 = arith.constant 0 : index
    %c0_116 = arith.constant 0 : index
    %126 = vector.load %arg8[%c8_114, %c0_115, %c0_116] : memref<16x8x128xf32, #tpu.memory_space<vmem>>, vector<1x8x128xf32>
    %127 = vector.shape_cast %126 : vector<1x8x128xf32> to vector<8x128xf32>
    %128 = vector.shape_cast %125 : vector<8x128xf32> to vector<1x8x128xf32>
    tpu.vector_store %arg8[%c8_114, %c0_115, %c0_116], %128 {strides = array<i32>} : memref<16x8x128xf32, #tpu.memory_space<vmem>>, vector<1x8x128xf32>,
    %c9 = arith.constant 9 : index
    %c0_117 = arith.constant 0 : index
    %c0_118 = arith.constant 0 : index
    %129 = vector.load %arg8[%c9, %c0_117, %c0_118] : memref<16x8x128xf32, #tpu.memory_space<vmem>>, vector<1x8x128xf32>
    %130 = vector.shape_cast %129 : vector<1x8x128xf32> to vector<8x128xf32>
    %c0_119 = arith.constant 0 : index
    %c9_120 = arith.constant 9 : index
    %c0_121 = arith.constant 0 : index
    %131 = vector.load %arg7[%c0_119, %c9_120, %c0_121] : memref<5x16x128xf32, #tpu.memory_space<vmem>>, vector<5x1x128xf32>
    %132 = vector.shape_cast %131 : vector<5x1x128xf32> to vector<5x128xf32>
    %cst_122 = arith.constant dense<0.000000e+00> : vector<8x128xf32>
    %133 = tpu.matmul %47, %132, %cst_122 {dimension_numbers = #tpu.dot_dimension_numbers<[1], [0], [0], [1], [0, 0, 1, 1], [], []>} : vector<8x5xf32>, vector<5x128xf32>, vector<8x128xf32> -> vector<8x128xf32>
    %134 = arith.addf %130, %133 : vector<8x128xf32>
    %c9_123 = arith.constant 9 : index
    %c0_124 = arith.constant 0 : index
    %c0_125 = arith.constant 0 : index
    %135 = vector.load %arg8[%c9_123, %c0_124, %c0_125] : memref<16x8x128xf32, #tpu.memory_space<vmem>>, vector<1x8x128xf32>
    %136 = vector.shape_cast %135 : vector<1x8x128xf32> to vector<8x128xf32>
    %137 = vector.shape_cast %134 : vector<8x128xf32> to vector<1x8x128xf32>
    tpu.vector_store %arg8[%c9_123, %c0_124, %c0_125], %137 {strides = array<i32>} : memref<16x8x128xf32, #tpu.memory_space<vmem>>, vector<1x8x128xf32>,
    %c10 = arith.constant 10 : index
    %c0_126 = arith.constant 0 : index
    %c0_127 = arith.constant 0 : index
    %138 = vector.load %arg8[%c10, %c0_126, %c0_127] : memref<16x8x128xf32, #tpu.memory_space<vmem>>, vector<1x8x128xf32>
    %139 = vector.shape_cast %138 : vector<1x8x128xf32> to vector<8x128xf32>
    %c0_128 = arith.constant 0 : index
    %c10_129 = arith.constant 10 : index
    %c0_130 = arith.constant 0 : index
    %140 = vector.load %arg7[%c0_128, %c10_129, %c0_130] : memref<5x16x128xf32, #tpu.memory_space<vmem>>, vector<5x1x128xf32>
    %141 = vector.shape_cast %140 : vector<5x1x128xf32> to vector<5x128xf32>
    %cst_131 = arith.constant dense<0.000000e+00> : vector<8x128xf32>
    %142 = tpu.matmul %47, %141, %cst_131 {dimension_numbers = #tpu.dot_dimension_numbers<[1], [0], [0], [1], [0, 0, 1, 1], [], []>} : vector<8x5xf32>, vector<5x128xf32>, vector<8x128xf32> -> vector<8x128xf32>
    %143 = arith.addf %139, %142 : vector<8x128xf32>
    %c10_132 = arith.constant 10 : index
    %c0_133 = arith.constant 0 : index
    %c0_134 = arith.constant 0 : index
    %144 = vector.load %arg8[%c10_132, %c0_133, %c0_134] : memref<16x8x128xf32, #tpu.memory_space<vmem>>, vector<1x8x128xf32>
    %145 = vector.shape_cast %144 : vector<1x8x128xf32> to vector<8x128xf32>
    %146 = vector.shape_cast %143 : vector<8x128xf32> to vector<1x8x128xf32>
    tpu.vector_store %arg8[%c10_132, %c0_133, %c0_134], %146 {strides = array<i32>} : memref<16x8x128xf32, #tpu.memory_space<vmem>>, vector<1x8x128xf32>,
    %c11 = arith.constant 11 : index
    %c0_135 = arith.constant 0 : index
    %c0_136 = arith.constant 0 : index
    %147 = vector.load %arg8[%c11, %c0_135, %c0_136] : memref<16x8x128xf32, #tpu.memory_space<vmem>>, vector<1x8x128xf32>
    %148 = vector.shape_cast %147 : vector<1x8x128xf32> to vector<8x128xf32>
    %c0_137 = arith.constant 0 : index
    %c11_138 = arith.constant 11 : index
    %c0_139 = arith.constant 0 : index
    %149 = vector.load %arg7[%c0_137, %c11_138, %c0_139] : memref<5x16x128xf32, #tpu.memory_space<vmem>>, vector<5x1x128xf32>
    %150 = vector.shape_cast %149 : vector<5x1x128xf32> to vector<5x128xf32>
    %cst_140 = arith.constant dense<0.000000e+00> : vector<8x128xf32>
    %151 = tpu.matmul %47, %150, %cst_140 {dimension_numbers = #tpu.dot_dimension_numbers<[1], [0], [0], [1], [0, 0, 1, 1], [], []>} : vector<8x5xf32>, vector<5x128xf32>, vector<8x128xf32> -> vector<8x128xf32>
    %152 = arith.addf %148, %151 : vector<8x128xf32>
    %c11_141 = arith.constant 11 : index
    %c0_142 = arith.constant 0 : index
    %c0_143 = arith.constant 0 : index
    %153 = vector.load %arg8[%c11_141, %c0_142, %c0_143] : memref<16x8x128xf32, #tpu.memory_space<vmem>>, vector<1x8x128xf32>
    %154 = vector.shape_cast %153 : vector<1x8x128xf32> to vector<8x128xf32>
    %155 = vector.shape_cast %152 : vector<8x128xf32> to vector<1x8x128xf32>
    tpu.vector_store %arg8[%c11_141, %c0_142, %c0_143], %155 {strides = array<i32>} : memref<16x8x128xf32, #tpu.memory_space<vmem>>, vector<1x8x128xf32>,
    %c12 = arith.constant 12 : index
    %c0_144 = arith.constant 0 : index
    %c0_145 = arith.constant 0 : index
    %156 = vector.load %arg8[%c12, %c0_144, %c0_145] : memref<16x8x128xf32, #tpu.memory_space<vmem>>, vector<1x8x128xf32>
    %157 = vector.shape_cast %156 : vector<1x8x128xf32> to vector<8x128xf32>
    %c0_146 = arith.constant 0 : index
    %c12_147 = arith.constant 12 : index
    %c0_148 = arith.constant 0 : index
    %158 = vector.load %arg7[%c0_146, %c12_147, %c0_148] : memref<5x16x128xf32, #tpu.memory_space<vmem>>, vector<5x1x128xf32>
    %159 = vector.shape_cast %158 : vector<5x1x128xf32> to vector<5x128xf32>
    %cst_149 = arith.constant dense<0.000000e+00> : vector<8x128xf32>
    %160 = tpu.matmul %47, %159, %cst_149 {dimension_numbers = #tpu.dot_dimension_numbers<[1], [0], [0], [1], [0, 0, 1, 1], [], []>} : vector<8x5xf32>, vector<5x128xf32>, vector<8x128xf32> -> vector<8x128xf32>
    %161 = arith.addf %157, %160 : vector<8x128xf32>
    %c12_150 = arith.constant 12 : index
    %c0_151 = arith.constant 0 : index
    %c0_152 = arith.constant 0 : index
    %162 = vector.load %arg8[%c12_150, %c0_151, %c0_152] : memref<16x8x128xf32, #tpu.memory_space<vmem>>, vector<1x8x128xf32>
    %163 = vector.shape_cast %162 : vector<1x8x128xf32> to vector<8x128xf32>
    %164 = vector.shape_cast %161 : vector<8x128xf32> to vector<1x8x128xf32>
    tpu.vector_store %arg8[%c12_150, %c0_151, %c0_152], %164 {strides = array<i32>} : memref<16x8x128xf32, #tpu.memory_space<vmem>>, vector<1x8x128xf32>,
    %c13 = arith.constant 13 : index
    %c0_153 = arith.constant 0 : index
    %c0_154 = arith.constant 0 : index
    %165 = vector.load %arg8[%c13, %c0_153, %c0_154] : memref<16x8x128xf32, #tpu.memory_space<vmem>>, vector<1x8x128xf32>
    %166 = vector.shape_cast %165 : vector<1x8x128xf32> to vector<8x128xf32>
    %c0_155 = arith.constant 0 : index
    %c13_156 = arith.constant 13 : index
    %c0_157 = arith.constant 0 : index
    %167 = vector.load %arg7[%c0_155, %c13_156, %c0_157] : memref<5x16x128xf32, #tpu.memory_space<vmem>>, vector<5x1x128xf32>
    %168 = vector.shape_cast %167 : vector<5x1x128xf32> to vector<5x128xf32>
    %cst_158 = arith.constant dense<0.000000e+00> : vector<8x128xf32>
    %169 = tpu.matmul %47, %168, %cst_158 {dimension_numbers = #tpu.dot_dimension_numbers<[1], [0], [0], [1], [0, 0, 1, 1], [], []>} : vector<8x5xf32>, vector<5x128xf32>, vector<8x128xf32> -> vector<8x128xf32>
    %170 = arith.addf %166, %169 : vector<8x128xf32>
    %c13_159 = arith.constant 13 : index
    %c0_160 = arith.constant 0 : index
    %c0_161 = arith.constant 0 : index
    %171 = vector.load %arg8[%c13_159, %c0_160, %c0_161] : memref<16x8x128xf32, #tpu.memory_space<vmem>>, vector<1x8x128xf32>
    %172 = vector.shape_cast %171 : vector<1x8x128xf32> to vector<8x128xf32>
    %173 = vector.shape_cast %170 : vector<8x128xf32> to vector<1x8x128xf32>
    tpu.vector_store %arg8[%c13_159, %c0_160, %c0_161], %173 {strides = array<i32>} : memref<16x8x128xf32, #tpu.memory_space<vmem>>, vector<1x8x128xf32>,
    %c14 = arith.constant 14 : index
    %c0_162 = arith.constant 0 : index
    %c0_163 = arith.constant 0 : index
    %174 = vector.load %arg8[%c14, %c0_162, %c0_163] : memref<16x8x128xf32, #tpu.memory_space<vmem>>, vector<1x8x128xf32>
    %175 = vector.shape_cast %174 : vector<1x8x128xf32> to vector<8x128xf32>
    %c0_164 = arith.constant 0 : index
    %c14_165 = arith.constant 14 : index
    %c0_166 = arith.constant 0 : index
    %176 = vector.load %arg7[%c0_164, %c14_165, %c0_166] : memref<5x16x128xf32, #tpu.memory_space<vmem>>, vector<5x1x128xf32>
    %177 = vector.shape_cast %176 : vector<5x1x128xf32> to vector<5x128xf32>
    %cst_167 = arith.constant dense<0.000000e+00> : vector<8x128xf32>
    %178 = tpu.matmul %47, %177, %cst_167 {dimension_numbers = #tpu.dot_dimension_numbers<[1], [0], [0], [1], [0, 0, 1, 1], [], []>} : vector<8x5xf32>, vector<5x128xf32>, vector<8x128xf32> -> vector<8x128xf32>
    %179 = arith.addf %175, %178 : vector<8x128xf32>
    %c14_168 = arith.constant 14 : index
    %c0_169 = arith.constant 0 : index
    %c0_170 = arith.constant 0 : index
    %180 = vector.load %arg8[%c14_168, %c0_169, %c0_170] : memref<16x8x128xf32, #tpu.memory_space<vmem>>, vector<1x8x128xf32>
    %181 = vector.shape_cast %180 : vector<1x8x128xf32> to vector<8x128xf32>
    %182 = vector.shape_cast %179 : vector<8x128xf32> to vector<1x8x128xf32>
    tpu.vector_store %arg8[%c14_168, %c0_169, %c0_170], %182 {strides = array<i32>} : memref<16x8x128xf32, #tpu.memory_space<vmem>>, vector<1x8x128xf32>,
    %c15 = arith.constant 15 : index
    %c0_171 = arith.constant 0 : index
    %c0_172 = arith.constant 0 : index
    %183 = vector.load %arg8[%c15, %c0_171, %c0_172] : memref<16x8x128xf32, #tpu.memory_space<vmem>>, vector<1x8x128xf32>
    %184 = vector.shape_cast %183 : vector<1x8x128xf32> to vector<8x128xf32>
    %c0_173 = arith.constant 0 : index
    %c15_174 = arith.constant 15 : index
    %c0_175 = arith.constant 0 : index
    %185 = vector.load %arg7[%c0_173, %c15_174, %c0_175] : memref<5x16x128xf32, #tpu.memory_space<vmem>>, vector<5x1x128xf32>
    %186 = vector.shape_cast %185 : vector<5x1x128xf32> to vector<5x128xf32>
    %cst_176 = arith.constant dense<0.000000e+00> : vector<8x128xf32>
    %187 = tpu.matmul %47, %186, %cst_176 {dimension_numbers = #tpu.dot_dimension_numbers<[1], [0], [0], [1], [0, 0, 1, 1], [], []>} : vector<8x5xf32>, vector<5x128xf32>, vector<8x128xf32> -> vector<8x128xf32>
    %188 = arith.addf %184, %187 : vector<8x128xf32>
    %c15_177 = arith.constant 15 : index
    %c0_178 = arith.constant 0 : index
    %c0_179 = arith.constant 0 : index
    %189 = vector.load %arg8[%c15_177, %c0_178, %c0_179] : memref<16x8x128xf32, #tpu.memory_space<vmem>>, vector<1x8x128xf32>
    %190 = vector.shape_cast %189 : vector<1x8x128xf32> to vector<8x128xf32>
    %191 = vector.shape_cast %188 : vector<8x128xf32> to vector<1x8x128xf32>
    tpu.vector_store %arg8[%c15_177, %c0_178, %c0_179], %191 {strides = array<i32>} : memref<16x8x128xf32, #tpu.memory_space<vmem>>, vector<1x8x128xf32>,
    %c3_i32 = arith.constant 3 : i32
    %192 = arith.cmpi eq, %arg1, %c3_i32 : i32
    %193 = arith.extui %192 : i1 to i32
    %c0_i32_180 = arith.constant 0 : i32
    %194 = arith.cmpi ne, %193, %c0_i32_180 : i32
    scf.if %194 {
      %c0_181 = arith.constant 0 : index
      %c0_182 = arith.constant 0 : index
      %195 = vector.load %arg5[%c0_181, %c0_182] : memref<8x1xf32, #tpu.memory_space<vmem>>, vector<8x1xf32>
      %196 = vector.shape_cast %195 : vector<8x1xf32> to vector<1x8x1xf32>
      %c0_183 = arith.constant 0 : index
      %c0_184 = arith.constant 0 : index
      %c0_185 = arith.constant 0 : index
      %197 = vector.load %arg8[%c0_183, %c0_184, %c0_185] : memref<16x8x128xf32, #tpu.memory_space<vmem>>, vector<16x8x128xf32>
      %198 = vector.broadcast %196 : vector<1x8x1xf32> to vector<16x8x128xf32>
      %199 = arith.addf %197, %198 : vector<16x8x128xf32>
      %c0_186 = arith.constant 0 : index
      %c0_187 = arith.constant 0 : index
      %c0_188 = arith.constant 0 : index
      %200 = vector.load %arg6[%c0_186, %c0_187, %c0_188] : memref<16x8x128xf32, #tpu.memory_space<vmem>>, vector<16x8x128xf32>
      tpu.vector_store %arg6[%c0_186, %c0_187, %c0_188], %199 {strides = array<i32>} : memref<16x8x128xf32, #tpu.memory_space<vmem>>, vector<16x8x128xf32>,
    } else {
    }
    return
  }
  func.func @transform_0(%arg0: i32, %arg1: i32) -> (i32, i32, i32) {
    %c0_i32 = arith.constant 0 : i32
    %c0_i32_0 = arith.constant 0 : i32
    %c0_i32_1 = arith.constant 0 : i32
    %c0_i32_2 = arith.constant 0 : i32
    return %c0_i32, %c0_i32_0, %c0_i32_1 : i32, i32, i32
  }
  func.func @transform_1(%arg0: i32, %arg1: i32) -> (i32, i32, i32) {
    %c0_i32 = arith.constant 0 : i32
    %c0_i32_0 = arith.constant 0 : i32
    return %arg1, %c0_i32, %arg0 : i32, i32, i32
  }
  func.func @transform_2(%arg0: i32, %arg1: i32) -> (i32, i32, i32) {
    %c0_i32 = arith.constant 0 : i32
    %c0_i32_0 = arith.constant 0 : i32
    %c0_i32_1 = arith.constant 0 : i32
    return %arg1, %c0_i32, %c0_i32_0 : i32, i32, i32
  }
  func.func @transform_3(%arg0: i32, %arg1: i32) -> (i32, i32) {
    %c0_i32 = arith.constant 0 : i32
    %c0_i32_0 = arith.constant 0 : i32
    %c0_i32_1 = arith.constant 0 : i32
    return %c0_i32, %c0_i32_0 : i32, i32
  }
  func.func @transform_4(%arg0: i32, %arg1: i32) -> (i32, i32, i32) {
    %c0_i32 = arith.constant 0 : i32
    %c0_i32_0 = arith.constant 0 : i32
    %c0_i32_1 = arith.constant 0 : i32
    return %c0_i32, %c0_i32_0, %arg0 : i32, i32, i32
  }
}

</mosaic_0001>

<bundles_post_ra>
// kernel: a_call__.1
= control target key start
LH: loop header
LB: loop body
LE: loop exit
PB: predicated region body
PF: predicated region fallthrough
CT: control target
= control target key end

     0   :  { %s1360_s15 = smov 0   ;;  %s1362_s16 = smov 0   ;;  %s1685_s0 = inlined_call_operand.vmem [shape: bf16[2,16,16], index: 0, kind: input, shape index: {}]   ;;  %s1686_s1 = inlined_call_operand.vmem [shape: f32[4,16,16], index: 1, kind: input, shape index: {}]   ;;  %s1687_s2 = inlined_call_operand.vmem [shape: f32[4,8,5], index: 2, kind: input, shape index: {}]   ;;  %s1688_s3 = inlined_call_operand.vmem [shape: f32[8,1], index: 3, kind: input, shape index: {}]   ;;  %s1689_s4 = inlined_call_operand.vmem [shape: f32[16,8,16], index: 4, kind: output, shape index: {}]  }
   0x1   :  { %s1364_s17 = smov 0  }
   0x2 LB: > { %s23_s18 = sadd.s32 1, %s1327_s16  ;;  %p1224_p0 = scmp.ge.s32.totalorder %s1331_s17, 1  ;;  %s1331_s17 = sphi %s1364_s17, %s14_s17   ;;  %s1327_s16 = sphi %s1362_s16, %s1691_s16   ;;  %s1323_s15 = sphi %s1360_s15, %s1690_s15  }
   0x3   : > { %p24_p1 = scmp.ge.s32.totalorder %s23_s18, 4  ;;  %p188_p2 = scmp.lt.s32.totalorder %s1331_s17, 5 }
   0x5   : > { %s1693_s18 = smov (%p24_p1, %s23_s18), 0  ;;  %p189_p3 = pnand %p1224_p0, %p188_p2 }
   0x6   : > { %p220_p4 = scmp.lt.s32.totalorder (!%p189_p3), %s1323_s15, 3  ;;  %p1228_p5 = scmp.ne.s32.totalorder (!%p189_p3), %s1323_s15, 0 }
   0x7   : > { %192 = sbr.rel (%p189_p3) target bundleno = 921 (0x399), region = 36 }
   0xc   : > { %s221_s19 = scalar_select %p220_p4, %s1323_s15, 3 }
   0xd   : > { %240 = sbr.rel (%p1228_p5) target bundleno = 35 (0x23), region = 40 }
   0xe   : > { %s1279_s20 = sshll.u32 %s221_s19, 4  ;;  %s1227_s21 = sshll.u32 %s221_s19, 3 }
   0xf   : > { %s227_s24 = scalar_lea.vmem %s1686_s1, %s1279_s20  ;;  %s1388_s27 = scalar_lea.vmem %s1687_s2, %s1227_s21 }
  0x12   : > { %v1333_v0 = vmov 0.0  }
  0x13   : > { %241 = vst [vmem:[#allocation3 + $0x30] sm:$0xff] %v1333_v0 }
  0x14   : > { %242 = vst [vmem:[#allocation3] sm:$0xff] %v1333_v0 }
  0x15   : > { %243 = vst [vmem:[#allocation3 + $0x58] sm:$0xff] %v1333_v0 }
  0x16   : > { %244 = vst [vmem:[#allocation3 + $0x18] sm:$0xff] %v1333_v0 }
  0x17   : > { %245 = vst [vmem:[#allocation3 + $0x50] sm:$0xff] %v1333_v0 }
  0x18   : > { %246 = vst [vmem:[#allocation3 + $0x68] sm:$0xff] %v1333_v0 }
  0x19   : > { %247 = vst [vmem:[#allocation3 + $0x8] sm:$0xff] %v1333_v0 }
  0x1a   : > { %248 = vst [vmem:[#allocation3 + $0x48] sm:$0xff] %v1333_v0 }
  0x1b   : > { %249 = vst [vmem:[#allocation3 + $0x40] sm:$0xff] %v1333_v0 }
  0x1c   : > { %250 = vst [vmem:[#allocation3 + $0x20] sm:$0xff] %v1333_v0 }
  0x1d   : > { %251 = vst [vmem:[#allocation3 + $0x10] sm:$0xff] %v1333_v0 }
  0x1e   : > { %252 = vst [vmem:[#allocation3 + $0x38] sm:$0xff] %v1333_v0 }
  0x1f   : > { %253 = vst [vmem:[#allocation3 + $0x60] sm:$0xff] %v1333_v0 }
  0x20   : > { %254 = vst [vmem:[#allocation3 + $0x70] sm:$0xff] %v1333_v0 }
  0x21   : > { %255 = vst [vmem:[#allocation3 + $0x78] sm:$0xff] %v1333_v0 }
  0x22   : > { %256 = vst [vmem:[#allocation3 + $0x28] sm:$0xff] %v1333_v0 }
  0x23 PF: > { %v257_v1 = vld [vmem:[%s227_s24] sm:$0xff]  ;;  %v258_v2 = vld [vmem:[%s227_s24 + $0x8] sm:$0xff]  ;;  %vm271_vm0 = vcmask 130048   ;;  %vm386_vm1 = vcmask 1041409   ;;  %vm389_vm2 = vcmask 1042434   ;;  %vm392_vm3 = vcmask 1043459  }
  0x24   : > { %261 = vst [vmem:[#allocation2] sm:$0xff] %v257_v1  ;;  %v265_v3 = vpack.c.bf16 %v258_v2, %v257_v1  ;;  %v1280_v4 = vld [vmem:[%s1685_s0] sm:$0xff]  ;;  %v1395_v5 = vmul.f32 0.05, %v257_v1  ;;  %v1398_v9 = vmul.f32 0.05, %v258_v2 }
  0x25   : > { %262 = vst [vmem:[#allocation2 + $0x8] sm:$0xff] %v258_v2  ;;  %v1281_v21 = vld [vmem:[%s1685_s0 + $0x8] sm:$0xff]  ;;  %vm395_vm4 = vcmask 1044484   ;;  %vm401_vm5 = vcmask 1044480   ;;  %vm397_vm6 = vcmask 39936   ;;  %p1275_p6 = scmp.ne.s32.totalorder %s1323_s15, 3 }
  0x26   : > { %282 = vmatpush.bf16.msra.mxu0 %v265_v3 }
  0x29   : > { %1233 = vmatmul.msk.bf16.vlgmr.msra.gmra.mxu0 %vm271_vm0, %v1280_v4 }
  0x2b   : > { %v375_v36 = vld [vmem:[#allocation2] sm:$0x1]  ;;  %v428_v40 = vld [vmem:[#allocation2 + $0x1] sm:$0x1]  ;;  %v472_v42 = vld [vmem:[#allocation2 + $0x2] sm:$0x1] }
  0x2c   : > { %v516_v46 = vld [vmem:[#allocation2 + $0x3] sm:$0x1]  ;;  %v560_v48 = vld [vmem:[#allocation2 + $0x4] sm:$0x1]  ;;  %v604_v56 = vld [vmem:[#allocation2 + $0x5] sm:$0x1] }
  0x2d   : > { %v648_v57 = vld [vmem:[#allocation2 + $0x6] sm:$0x1]  ;;  %v692_v1 = vld [vmem:[#allocation2 + $0x7] sm:$0x1]  ;;  %v736_v2 = vld [vmem:[#allocation2 + $0x8] sm:$0x1] }
  0xa6   : > { %v284_v6 = vpop.f32.mrf.mxu0 }
  0xa7   : > { %v289_v7 = vmul.f32 0.95, %v284_v6 }
  0xa9   : > { %v291_v8 = vadd.f32 %v289_v7, %v1395_v5 }
  0xab   : > { %294 = vst [vmem:[#allocation2 + $0x10] sm:$0xff] %v291_v8 }
  0xae   : > { %v286_v10 = vpop.f32.mrf.mxu0 }
  0xaf   : > { %v290_v11 = vmul.f32 0.95, %v286_v10  ;;  %v780_v10 = vld [vmem:[#allocation2 + $0x9] sm:$0x1] }
  0xb1   : > { %v292_v12 = vadd.f32 %v290_v11, %v1398_v9  ;;  %v824_v11 = vld [vmem:[#allocation2 + $0xa] sm:$0x1] }
  0xb2   : > { %v376_v29 = vld [vmem:[#allocation2 + $0x10] sm:$0x1]  ;;  %v429_v30 = vld [vmem:[#allocation2 + $0x11] sm:$0x1]  ;;  %v473_v31 = vld [vmem:[#allocation2 + $0x12] sm:$0x1] }
  0xb3   : > { %295 = vst [vmem:[#allocation2 + $0x18] sm:$0xff] %v292_v12  ;;  %v296_v13 = vpack.c.bf16 %v292_v12, %v291_v8  ;;  %v517_v32 = vld [vmem:[#allocation2 + $0x13] sm:$0x1]  ;;  %v561_v33 = vld [vmem:[#allocation2 + $0x14] sm:$0x1]  ;;  %v385_v37 = vrot.slane %v376_v29, 7 }
  0xb4   : > { %v605_v34 = vld [vmem:[#allocation2 + $0x15] sm:$0x1]  ;;  %v1411_v35 = vld [vmem:[#allocation2 + $0x16] sm:$0x1]  ;;  %v1413_v38 = vld [vmem:[#allocation2 + $0x17] sm:$0x1] }
  0xb5   : > { %304 = vmatpush.bf16.msra.mxu1 %v296_v13  ;;  %v438_v41 = vrot.slane %v429_v30, 7  ;;  %v482_v43 = vrot.slane %v473_v31, 7  ;;  %v526_v47 = vrot.slane %v517_v32, 7  ;;  %v570_v49 = vrot.slane %v561_v33, 7  ;;  %v868_v12 = vld [vmem:[#allocation2 + $0xb] sm:$0x1] }
  0xb6   : > { %v614_v50 = vrot.slane %v605_v34, 7  ;;  %v658_v51 = vrot.slane %v1411_v35, 7  ;;  %v702_v52 = vrot.slane %v1413_v38, 7  ;;  %v1426_v63 = vsel %vm386_vm1, %v385_v37, %v375_v36 }
  0xb7   : > { %v1434_v7 = vsel %vm386_vm1, %v482_v43, %v472_v42 }
  0xb8   : > { %1234 = vmatmul.msk.bf16.vlgmr.msra.gmra.mxu1 %vm271_vm0, %v1280_v4  ;;  %v439_v4 = vsel %vm386_vm1, %v438_v41, %v428_v40  ;;  %v615_v30 = vsel %vm386_vm1, %v614_v50, %v604_v56  ;;  %v659_v32 = vsel %vm386_vm1, %v658_v51, %v648_v57  ;;  %v703_v36 = vsel %vm386_vm1, %v702_v52, %v692_v1 }
  0xba   : > { %v1415_v39 = vld [vmem:[#allocation2 + $0x18] sm:$0x1]  ;;  %v781_v44 = vld [vmem:[#allocation2 + $0x19] sm:$0x1]  ;;  %v1417_v45 = vld [vmem:[#allocation2 + $0x1a] sm:$0x1] }
  0xbb   : > { %v746_v53 = vrot.slane %v1415_v39, 7  ;;  %v869_v54 = vld [vmem:[#allocation2 + $0x1b] sm:$0x1]  ;;  %v913_v55 = vld [vmem:[#allocation2 + $0x1c] sm:$0x1]  ;;  %v790_v58 = vrot.slane %v781_v44, 7 }
  0xbc   : > { %v834_v59 = vrot.slane %v1417_v45, 7  ;;  %v957_v60 = vld [vmem:[#allocation2 + $0x1d] sm:$0x1]  ;;  %v1001_v61 = vld [vmem:[#allocation2 + $0x1e] sm:$0x1]  ;;  %v878_v13 = vrot.slane %v869_v54, 7 }
  0xbd   : > { %v1045_v3 = vld [vmem:[#allocation2 + $0x1f] sm:$0x1]  ;;  %v747_v38 = vsel %vm386_vm1, %v746_v53, %v736_v2  ;;  %v791_v41 = vsel %vm386_vm1, %v790_v58, %v780_v10 }
  0xbe   : > { %v835_v43 = vsel %vm386_vm1, %v834_v59, %v824_v11  ;;  %v879_v45 = vsel %vm386_vm1, %v878_v13, %v868_v12 }
 0x135   : > { %v306_v14 = vpop.f32.mrf.mxu1 }
 0x136   : > { %v311_v15 = vmul.f32 0.95, %v306_v14  ;;  %v912_v14 = vld [vmem:[#allocation2 + $0xc] sm:$0x1] }
 0x138   : > { %v313_v16 = vadd.f32 %v311_v15, %v1395_v5  ;;  %v922_v15 = vrot.slane %v913_v55, 7 }
 0x13a   : > { %316 = vst [vmem:[#allocation2 + $0x20] sm:$0xff] %v313_v16 }
 0x13d   : > { %v308_v17 = vpop.f32.mrf.mxu1 }
 0x13e   : > { %v312_v18 = vmul.f32 0.95, %v308_v17 }
 0x140   : > { %v314_v19 = vadd.f32 %v312_v18, %v1398_v9  ;;  %v571_v18 = vsel %vm386_vm1, %v570_v49, %v560_v48 }
 0x141   : > { %v1423_v62 = vld [vmem:[#allocation2 + $0x20] sm:$0x1]  ;;  %v1428_v0 = vld [vmem:[#allocation2 + $0x21] sm:$0x1]  ;;  %v1431_v6 = vld [vmem:[#allocation2 + $0x22] sm:$0x1] }
 0x142   : > { %317 = vst [vmem:[#allocation2 + $0x28] sm:$0xff] %v314_v19  ;;  %v321_v20 = vpack.c.bf16 %v314_v19, %v313_v16  ;;  %v1436_v8 = vld [vmem:[#allocation2 + $0x23] sm:$0x1]  ;;  %v527_v16 = vsel %vm386_vm1, %v526_v47, %v516_v46  ;;  %v562_v17 = vld [vmem:[#allocation2 + $0x24] sm:$0x1]  ;;  %v923_v47 = vsel %vm386_vm1, %v922_v15, %v912_v14 }
 0x143   : > { %v606_v19 = vld [vmem:[#allocation2 + $0x25] sm:$0x1]  ;;  %v528_v29 = vrot.slane %v1436_v8, 6  ;;  %v650_v31 = vld [vmem:[#allocation2 + $0x26] sm:$0x1]  ;;  %v572_v34 = vrot.slane %v562_v17, 6 }
 0x144   : > { %337 = vmatpush.bf16.msra.mxu2 %v321_v20  ;;  %v956_v20 = vld [vmem:[#allocation2 + $0xd] sm:$0x1]  ;;  %v694_v33 = vld [vmem:[#allocation2 + $0x27] sm:$0x1]  ;;  %v616_v35 = vrot.slane %v606_v19, 6  ;;  %v660_v54 = vrot.slane %v650_v31, 6 }
 0x145   : > { %v704_v55 = vrot.slane %v694_v33, 6  ;;  %v529_v12 = vsel %vm389_vm2, %v528_v29, %v527_v16  ;;  %v573_v13 = vsel %vm389_vm2, %v572_v34, %v571_v18 }
 0x146   : > { %v661_v19 = vsel %vm389_vm2, %v660_v54, %v659_v32 }
 0x147   : > { %1241 = vmatmul.msk.bf16.vlgmr.msra.gmra.mxu2 %vm271_vm0, %v1281_v21 }
 0x149   : > { %v738_v37 = vld [vmem:[#allocation2 + $0x28] sm:$0x1]  ;;  %v782_v39 = vld [vmem:[#allocation2 + $0x29] sm:$0x1]  ;;  %v826_v42 = vld [vmem:[#allocation2 + $0x2a] sm:$0x1] }
 0x14a   : > { %v870_v44 = vld [vmem:[#allocation2 + $0x2b] sm:$0x1]  ;;  %v914_v46 = vld [vmem:[#allocation2 + $0x2c] sm:$0x1]  ;;  %v1452_v49 = vld [vmem:[#allocation2 + $0x2d] sm:$0x1] }
 0x14b   : > { %v1457_v51 = vld [vmem:[#allocation2 + $0x2e] sm:$0x1]  ;;  %v748_v56 = vrot.slane %v738_v37, 6  ;;  %v792_v57 = vrot.slane %v782_v39, 6  ;;  %v1465_v58 = vld [vmem:[#allocation2 + $0x2f] sm:$0x1] }
 0x14c   : > { %v1012_v8 = vrot.slane %v1457_v51, 6  ;;  %v1056_v14 = vrot.slane %v1465_v58, 6 }
 0x1ca   : > { %v339_v22 = vpop.f32.mrf.mxu2 }
 0x1cb   : > { %v344_v23 = vmul.f32 0.95, %v339_v22  ;;  %v1000_v22 = vld [vmem:[#allocation2 + $0xe] sm:$0x1] }
 0x1cd   : > { %v346_v24 = vadd.f32 %v344_v23, %v1395_v5  ;;  %v1010_v23 = vrot.slane %v1001_v61, 7  ;;  %v880_v61 = vrot.slane %v870_v44, 6 }
 0x1cf   : > { %349 = vst [vmem:[#allocation2 + $0x30] sm:$0xff] %v346_v24  ;;  %v1460_v52 = vsel %vm386_vm1, %v1010_v23, %v1000_v22  ;;  %v1493_v22 = vsel %vm389_vm2, %v792_v57, %v791_v41 }
 0x1d2   : > { %v341_v25 = vpop.f32.mrf.mxu2 }
 0x1d3   : > { %v345_v26 = vmul.f32 0.95, %v341_v25  ;;  %v440_v25 = vrot.slane %v1428_v0, 6 }
 0x1d5   : > { %v347_v27 = vadd.f32 %v345_v26, %v1398_v9  ;;  %v1044_v26 = vld [vmem:[#allocation2 + $0xf] sm:$0x1] }
 0x1d6   : > { %v378_v0 = vld [vmem:[#allocation2 + $0x30] sm:$0x1]  ;;  %v431_v2 = vld [vmem:[#allocation2 + $0x31] sm:$0x1]  ;;  %v475_v10 = vld [vmem:[#allocation2 + $0x32] sm:$0x1] }
 0x1d7   : > { %350 = vst [vmem:[#allocation2 + $0x38] sm:$0xff] %v347_v27  ;;  %v351_v28 = vpack.c.bf16 %v347_v27, %v346_v24  ;;  %v388_v24 = vrot.slane %v1423_v62, 6  ;;  %v1054_v27 = vrot.slane %v1045_v3, 7  ;;  %v924_v62 = vrot.slane %v914_v46, 6  ;;  %v607_v15 = vld [vmem:[#allocation2 + $0x35] sm:$0x1] }
 0x1d8   : > { %v441_v3 = vsel %vm389_vm2, %v440_v25, %v439_v4  ;;  %v617_v4 = vsel %vm389_vm2, %v616_v35, %v615_v30  ;;  %v651_v17 = vld [vmem:[#allocation2 + $0x36] sm:$0x1]  ;;  %v486_v29 = vrot.slane %v475_v10, 5  ;;  %v618_v34 = vrot.slane %v607_v15, 5 }
 0x1d9   : > { %359 = vmatpush.bf16.msra.mxu3 %v351_v28  ;;  %v484_v28 = vrot.slane %v1431_v6, 6  ;;  %v1463_v53 = vsel %vm386_vm1, %v1054_v27, %v1044_v26  ;;  %v390_v1 = vsel %vm389_vm2, %v388_v24, %v1426_v63  ;;  %v968_v6 = vrot.slane %v1452_v49, 6  ;;  %v563_v63 = vld [vmem:[#allocation2 + $0x34] sm:$0x1] }
 0x1da   : > { %v1499_v24 = vsel %vm389_vm2, %v880_v61, %v879_v45  ;;  %v1502_v25 = vsel %vm389_vm2, %v924_v62, %v923_v47  ;;  %v391_v27 = vrot.slane %v378_v0, 5  ;;  %v574_v33 = vrot.slane %v563_v63, 5 }
 0x1db   : > { %v485_v11 = vsel %vm389_vm2, %v484_v28, %v1434_v7  ;;  %v1486_v7 = vld [vmem:[#allocation2 + $0x37] sm:$0x1]  ;;  %v442_v28 = vrot.slane %v431_v2, 5  ;;  %v662_v35 = vrot.slane %v651_v17, 5 }
 0x1dc   : > { %1242 = vmatmul.msk.bf16.vlgmr.msra.gmra.mxu3 %vm271_vm0, %v1281_v21  ;;  %v966_v21 = vrot.slane %v957_v60, 7  ;;  %v836_v60 = vrot.slane %v826_v42, 6  ;;  %v393_v42 = vsel %vm392_vm3, %v391_v27, %v390_v1  ;;  %v487_v46 = vsel %vm392_vm3, %v486_v29, %v485_v11 }
 0x1dd   : > { %v443_v44 = vsel %vm392_vm3, %v442_v28, %v441_v3  ;;  %v619_v1 = vsel %vm392_vm3, %v618_v34, %v617_v4  ;;  %v663_v2 = vsel %vm392_vm3, %v662_v35, %v661_v19 }
 0x1de   : > { %v1455_v50 = vsel %vm386_vm1, %v966_v21, %v956_v20  ;;  %v1481_v20 = vsel %vm389_vm2, %v704_v55, %v703_v36  ;;  %v1484_v21 = vsel %vm389_vm2, %v748_v56, %v747_v38  ;;  %v1488_v16 = vld [vmem:[#allocation2 + $0x38] sm:$0x1]  ;;  %v1490_v18 = vld [vmem:[#allocation2 + $0x39] sm:$0x1]  ;;  %v1496_v23 = vsel %vm389_vm2, %v836_v60, %v835_v43  ;;  %v1504_v31 = vld [vmem:[#allocation2 + $0x3a] sm:$0x1] }
 0x1df   : > { %v706_v36 = vrot.slane %v1486_v7, 5  ;;  %v750_v37 = vrot.slane %v1488_v16, 5  ;;  %v794_v38 = vrot.slane %v1490_v18, 5  ;;  %v1517_v54 = vld [vmem:[#allocation2 + $0x3c] sm:$0x1] }
 0x1e0   : > { %v959_v60 = vld [vmem:[#allocation2 + $0x3d] sm:$0x1]  ;;  %v1003_v7 = vld [vmem:[#allocation2 + $0x3e] sm:$0x1]  ;;  %v926_v29 = vrot.slane %v1517_v54, 5 }
 0x1e1   : > { %v707_v27 = vsel %vm392_vm3, %v706_v36, %v1481_v20  ;;  %v970_v34 = vrot.slane %v959_v60, 5  ;;  %v1047_v35 = vld [vmem:[#allocation2 + $0x3f] sm:$0x1]  ;;  %v969_v20 = vsel %vm389_vm2, %v968_v6, %v1455_v50  ;;  %v1013_v36 = vsel %vm389_vm2, %v1012_v8, %v1460_v52  ;;  %v374_v60 = vld [vmem:[#allocation3 + $0x30] sm:$0xff] }
 0x1e2   : > { %v751_v49 = vsel %vm392_vm3, %v750_v37, %v1484_v21  ;;  %v795_v51 = vsel %vm392_vm3, %v794_v38, %v1493_v22  ;;  %v1058_v21 = vrot.slane %v1047_v35, 5  ;;  %v927_v37 = vsel %vm392_vm3, %v926_v29, %v1502_v25  ;;  %v779_v29 = vld [vmem:[#allocation3 + $0x20] sm:$0xff] }
 0x25f   : > { %v361_v40 = vpop.f32.mrf.mxu3 }
 0x260   : > { %v366_v48 = vmul.f32 0.95, %v361_v40  ;;  %v838_v40 = vrot.slane %v1504_v31, 5 }
 0x262   : > { %v368_v59 = vadd.f32 %v366_v48, %v1395_v5  ;;  %v519_v5 = vld [vmem:[#allocation2 + $0x33] sm:$0x1]  ;;  %v1515_v48 = vld [vmem:[#allocation2 + $0x3b] sm:$0x1] }
 0x263   : > { %v530_v30 = vrot.slane %v519_v5, 5  ;;  %v1526_v5 = vld [vmem:[%s1388_s27] sm:$0xff]  ;;  %v882_v28 = vrot.slane %v1515_v48, 5 }
 0x264   : > { %371 = vst [vmem:[#allocation2 + $0x40] sm:$0xff] %v368_v59  ;;  %v575_v59 = vsel %vm392_vm3, %v574_v33, %v573_v13 }
 0x265   : > { %v531_v47 = vsel %vm392_vm3, %v530_v30, %v529_v12  ;;  %v883_v16 = vsel %vm392_vm3, %v882_v28, %v1499_v24  ;;  %v735_v28 = vld [vmem:[#allocation3 + $0x40] sm:$0xff] }
 0x267   : > { %v363_v26 = vpop.f32.mrf.mxu3 }
 0x268   : > { %v367_v32 = vmul.f32 0.95, %v363_v26 }
 0x26a   : > { %v369_v39 = vadd.f32 %v367_v32, %v1398_v9 }
 0x26b   : > { %v379_v41 = vld [vmem:[#allocation2 + $0x40] sm:$0x1]  ;;  %v432_v43 = vld [vmem:[#allocation2 + $0x41] sm:$0x1]  ;;  %v476_v45 = vld [vmem:[#allocation2 + $0x42] sm:$0x1] }
 0x26c   : > { %372 = vst [vmem:[#allocation2 + $0x48] sm:$0xff] %v369_v39  ;;  %v394_v9 = vrot.slane %v379_v41, 4  ;;  %v444_v55 = vrot.slane %v432_v43, 4  ;;  %v488_v56 = vrot.slane %v476_v45, 4  ;;  %v520_v57 = vld [vmem:[#allocation2 + $0x43] sm:$0x1]  ;;  %v1057_v41 = vsel %vm389_vm2, %v1056_v14, %v1463_v53 }
 0x26d   : > { %v532_v61 = vrot.slane %v520_v57, 4  ;;  %v564_v62 = vld [vmem:[#allocation2 + $0x44] sm:$0x1]  ;;  %v608_v0 = vld [vmem:[#allocation2 + $0x45] sm:$0x1]  ;;  %v1014_v39 = vrot.slane %v1003_v7, 5  ;;  %v839_v53 = vsel %vm392_vm3, %v838_v40, %v1496_v23  ;;  %v971_v23 = vsel %vm392_vm3, %v970_v34, %v969_v20 }
 0x26e   : > { %v396_v3 = vsel %vm395_vm4, %v394_v9, %v393_v42  ;;  %v445_v10 = vsel %vm395_vm4, %v444_v55, %v443_v44  ;;  %v489_v11 = vsel %vm395_vm4, %v488_v56, %v487_v46  ;;  %v576_v12 = vrot.slane %v564_v62, 4  ;;  %v652_v63 = vld [vmem:[#allocation2 + $0x46] sm:$0x1]  ;;  %v696_v13 = vld [vmem:[#allocation2 + $0x47] sm:$0x1] }
 0x26f   : > { %1243 = vmatpush.msk.msrb.mxu0 %vm401_vm5, %v396_v3  ;;  %1245 = vmatpush.msk.msrb.mxu1 %vm401_vm5, %v445_v10  ;;  %v533_v15 = vsel %vm395_vm4, %v532_v61, %v531_v47  ;;  %v620_v4 = vrot.slane %v608_v0, 4  ;;  %v664_v17 = vrot.slane %v652_v63, 4  ;;  %v708_v19 = vrot.slane %v696_v13, 4  ;;  %v427_v61 = vld [vmem:[#allocation3] sm:$0xff]  ;;  %v471_v3 = vld [vmem:[#allocation3 + $0x58] sm:$0xff] }
 0x270   : > { %1247 = vmatpush.msk.msrb.mxu2 %vm401_vm5, %v489_v11  ;;  %1249 = vmatpush.msk.msrb.mxu3 %vm401_vm5, %v533_v15  ;;  %v577_v26 = vsel %vm395_vm4, %v576_v12, %v575_v59  ;;  %v1015_v9 = vsel %vm392_vm3, %v1014_v39, %v1013_v36  ;;  %v1059_v55 = vsel %vm392_vm3, %v1058_v21, %v1057_v41  ;;  %v515_v10 = vld [vmem:[#allocation3 + $0x18] sm:$0xff]  ;;  %v559_v11 = vld [vmem:[#allocation3 + $0x50] sm:$0xff]  ;;  %v603_v12 = vld [vmem:[#allocation3 + $0x68] sm:$0xff] }
 0x271   : > { %1244 = vmatmul.msk.f32.vlgmr.msrb.gmra.mxu0 %vm397_vm6, %v1526_v5  ;;  %1246 = vmatmul.msk.f32.vlgmr.msrb.gmra.mxu1 %vm397_vm6, %v1526_v5  ;;  %v621_v30 = vsel %vm395_vm4, %v620_v4, %v619_v1  ;;  %v665_v32 = vsel %vm395_vm4, %v664_v17, %v663_v2  ;;  %v709_v33 = vsel %vm395_vm4, %v708_v19, %v707_v27  ;;  %v691_v27 = vld [vmem:[#allocation3 + $0x48] sm:$0xff]  ;;  %v823_v41 = vld [vmem:[#allocation3 + $0x10] sm:$0xff] }
 0x272   : > { %1248 = vmatmul.msk.f32.vlgmr.msrb.gmra.mxu2 %vm397_vm6, %v1526_v5  ;;  %1250 = vmatmul.msk.f32.vlgmr.msrb.gmra.mxu3 %vm397_vm6, %v1526_v5 }
 0x273   : > { %1251 = vmatpush.msk.msra.mxu0 %vm401_vm5, %v577_v26  ;;  %1253 = vmatpush.msk.msra.mxu1 %vm401_vm5, %v621_v30  ;;  %v740_v42 = vld [vmem:[#allocation2 + $0x48] sm:$0x1]  ;;  %v784_v50 = vld [vmem:[#allocation2 + $0x49] sm:$0x1]  ;;  %v828_v52 = vld [vmem:[#allocation2 + $0x4a] sm:$0x1] }
 0x274   : > { %1255 = vmatpush.msk.msra.mxu2 %vm401_vm5, %v665_v32  ;;  %1257 = vmatpush.msk.msra.mxu3 %vm401_vm5, %v709_v33  ;;  %v752_v58 = vrot.slane %v740_v42, 4  ;;  %v796_v6 = vrot.slane %v784_v50, 4  ;;  %v840_v8 = vrot.slane %v828_v52, 4  ;;  %v872_v14 = vld [vmem:[#allocation2 + $0x4b] sm:$0x1]  ;;  %v647_v26 = vld [vmem:[#allocation3 + $0x8] sm:$0xff] }
 0x275   : > { %v884_v18 = vrot.slane %v872_v14, 4  ;;  %v916_v22 = vld [vmem:[#allocation2 + $0x4c] sm:$0x1]  ;;  %v960_v31 = vld [vmem:[#allocation2 + $0x4d] sm:$0x1]  ;;  %v955_v50 = vld [vmem:[#allocation3 + $0x70] sm:$0xff] }
 0x276   : > { %v753_v38 = vsel %vm395_vm4, %v752_v58, %v751_v49  ;;  %v797_v40 = vsel %vm395_vm4, %v796_v6, %v795_v51  ;;  %v841_v43 = vsel %vm395_vm4, %v840_v8, %v839_v53  ;;  %v928_v44 = vrot.slane %v916_v22, 4  ;;  %v1004_v45 = vld [vmem:[#allocation2 + $0x4e] sm:$0x1]  ;;  %v1048_v46 = vld [vmem:[#allocation2 + $0x4f] sm:$0x1]  ;;  %v911_v49 = vld [vmem:[#allocation3 + $0x60] sm:$0xff] }
 0x277   : > { %1259 = vmatpush.msk.msrb.mxu0 %vm401_vm5, %v753_v38  ;;  %1261 = vmatpush.msk.msrb.mxu1 %vm401_vm5, %v797_v40  ;;  %v885_v24 = vsel %vm395_vm4, %v884_v18, %v883_v16  ;;  %v972_v47 = vrot.slane %v960_v31, 4  ;;  %v1016_v25 = vrot.slane %v1004_v45, 4  ;;  %v1060_v48 = vrot.slane %v1048_v46, 4  ;;  %v867_v42 = vld [vmem:[#allocation3 + $0x38] sm:$0xff]  ;;  %v1043_v18 = vld [vmem:[#allocation3 + $0x28] sm:$0xff] }
 0x278   : > { %1263 = vmatpush.msk.msrb.mxu2 %vm401_vm5, %v841_v43  ;;  %1265 = vmatpush.msk.msrb.mxu3 %vm401_vm5, %v885_v24  ;;  %v929_v54 = vsel %vm395_vm4, %v928_v44, %v927_v37  ;;  %v999_v16 = vld [vmem:[#allocation3 + $0x78] sm:$0xff] }
 0x279   : > { %1252 = vmatmul.msk.f32.vlgmr.msra.gmra.mxu0 %vm397_vm6, %v1526_v5  ;;  %1254 = vmatmul.msk.f32.vlgmr.msra.gmra.mxu1 %vm397_vm6, %v1526_v5  ;;  %v973_v56 = vsel %vm395_vm4, %v972_v47, %v971_v23  ;;  %v1017_v57 = vsel %vm395_vm4, %v1016_v25, %v1015_v9  ;;  %v1061_v59 = vsel %vm395_vm4, %v1060_v48, %v1059_v55 }
 0x27a   : > { %1256 = vmatmul.msk.f32.vlgmr.msra.gmra.mxu2 %vm397_vm6, %v1526_v5  ;;  %1258 = vmatmul.msk.f32.vlgmr.msra.gmra.mxu3 %vm397_vm6, %v1526_v5 }
 0x27b   : > { %1267 = vmatpush.msk.msra.mxu0 %vm401_vm5, %v929_v54  ;;  %1269 = vmatpush.msk.msra.mxu1 %vm401_vm5, %v973_v56 }
 0x27c   : > { %1271 = vmatpush.msk.msra.mxu2 %vm401_vm5, %v1017_v57  ;;  %1273 = vmatpush.msk.msra.mxu3 %vm401_vm5, %v1061_v59 }
 0x281   : > { %1260 = vmatmul.msk.f32.vlgmr.msrb.gmra.mxu0 %vm397_vm6, %v1526_v5  ;;  %1262 = vmatmul.msk.f32.vlgmr.msrb.gmra.mxu1 %vm397_vm6, %v1526_v5 }
 0x282   : > { %1264 = vmatmul.msk.f32.vlgmr.msrb.gmra.mxu2 %vm397_vm6, %v1526_v5  ;;  %1266 = vmatmul.msk.f32.vlgmr.msrb.gmra.mxu3 %vm397_vm6, %v1526_v5 }
 0x289   : > { %1268 = vmatmul.msk.f32.vlgmr.msra.gmra.mxu0 %vm397_vm6, %v1526_v5  ;;  %1270 = vmatmul.msk.f32.vlgmr.msra.gmra.mxu1 %vm397_vm6, %v1526_v5 }
 0x28a   : > { %1272 = vmatmul.msk.f32.vlgmr.msra.gmra.mxu2 %vm397_vm6, %v1526_v5  ;;  %1274 = vmatmul.msk.f32.vlgmr.msra.gmra.mxu3 %vm397_vm6, %v1526_v5 }
 0x2ee   : > { %v421_v62 = vpop.f32.mrf.mxu0  ;;  %v465_v0 = vpop.f32.mrf.mxu1 }
 0x2ef   : > { %v424_v1 = vadd.f32 %v421_v62, %v374_v60  ;;  %v468_v2 = vadd.f32 %v465_v0, %v427_v61 }
 0x2f1   : > { %425 = vst [vmem:[#allocation3 + $0x30] sm:$0xff] %v424_v1 }
 0x2f2   : > { %469 = vst [vmem:[#allocation3] sm:$0xff] %v468_v2 }
 0x2f5   : > { %v509_v63 = vpop.f32.mrf.mxu2  ;;  %v553_v13 = vpop.f32.mrf.mxu3 }
 0x2f6   : > { %v512_v15 = vadd.f32 %v509_v63, %v471_v3  ;;  %v556_v4 = vadd.f32 %v553_v13, %v515_v10  ;;  %v597_v17 = vpop.f32.mrf.mxu0  ;;  %v641_v19 = vpop.f32.mrf.mxu1 }
 0x2f7   : > { %v600_v7 = vadd.f32 %v597_v17, %v559_v11  ;;  %v644_v5 = vadd.f32 %v641_v19, %v603_v12 }
 0x2f8   : > { %513 = vst [vmem:[#allocation3 + $0x58] sm:$0xff] %v512_v15 }
 0x2f9   : > { %557 = vst [vmem:[#allocation3 + $0x18] sm:$0xff] %v556_v4 }
 0x2fa   : > { %601 = vst [vmem:[#allocation3 + $0x50] sm:$0xff] %v600_v7 }
 0x2fb   : > { %645 = vst [vmem:[#allocation3 + $0x68] sm:$0xff] %v644_v5 }
 0x2fd   : > { %v685_v30 = vpop.f32.mrf.mxu2  ;;  %v729_v32 = vpop.f32.mrf.mxu3 }
 0x2fe   : > { %v688_v33 = vadd.f32 %v685_v30, %v647_v26  ;;  %v732_v34 = vadd.f32 %v729_v32, %v691_v27  ;;  %v773_v35 = vpop.f32.mrf.mxu0  ;;  %v817_v20 = vpop.f32.mrf.mxu1 }
 0x2ff   : > { %v776_v36 = vadd.f32 %v773_v35, %v735_v28  ;;  %v820_v39 = vadd.f32 %v817_v20, %v779_v29 }
 0x300   : > { %689 = vst [vmem:[#allocation3 + $0x8] sm:$0xff] %v688_v33 }
 0x301   : > { %733 = vst [vmem:[#allocation3 + $0x48] sm:$0xff] %v732_v34 }
 0x302   : > { %777 = vst [vmem:[#allocation3 + $0x40] sm:$0xff] %v776_v36 }
 0x303   : > { %821 = vst [vmem:[#allocation3 + $0x20] sm:$0xff] %v820_v39 }
 0x305   : > { %v861_v51 = vpop.f32.mrf.mxu2  ;;  %v905_v52 = vpop.f32.mrf.mxu3 }
 0x306   : > { %v864_v53 = vadd.f32 %v861_v51, %v823_v41  ;;  %v908_v58 = vadd.f32 %v905_v52, %v867_v42  ;;  %v949_v6 = vpop.f32.mrf.mxu0  ;;  %v993_v8 = vpop.f32.mrf.mxu1 }
 0x307   : > { %v952_v14 = vadd.f32 %v949_v6, %v911_v49  ;;  %v996_v21 = vadd.f32 %v993_v8, %v955_v50 }
 0x308   : > { %865 = vst [vmem:[#allocation3 + $0x10] sm:$0xff] %v864_v53 }
 0x309   : > { %909 = vst [vmem:[#allocation3 + $0x38] sm:$0xff] %v908_v58 }
 0x30a   : > { %953 = vst [vmem:[#allocation3 + $0x60] sm:$0xff] %v952_v14 }
 0x30b   : > { %997 = vst [vmem:[#allocation3 + $0x70] sm:$0xff] %v996_v21 }
 0x30d   : > { %v1037_v22 = vpop.f32.mrf.mxu2  ;;  %v1081_v37 = vpop.f32.mrf.mxu3  ;;  %1089 = sbr.rel (%p1275_p6) target bundleno = 921 (0x399), region = 44 }
 0x30e   : > { %v1040_v31 = vadd.f32 %v1037_v22, %v999_v16  ;;  %v1084_v23 = vadd.f32 %v1081_v37, %v1043_v18 }
 0x310   : > { %1041 = vst [vmem:[#allocation3 + $0x78] sm:$0xff] %v1040_v31 }
 0x311   : > { %1085 = vst [vmem:[#allocation3 + $0x28] sm:$0xff] %v1084_v23 }
 0x312   : > { %v1090_v38 = vld [vmem:[%s1688_s3] sm:$0xff]  ;;  %v1334_v40 = vmov 0   ;;  %v1092_v44 = vld [vmem:[#allocation3] sm:$0xff]  ;;  %v1093_v45 = vld [vmem:[#allocation3 + $0x58] sm:$0xff] }
 0x313   : > { %1308 = vset.pattern.permute.xlu0 %v1334_v40  ;;  %v1091_v43 = vld [vmem:[#allocation3 + $0x30] sm:$0xff]  ;;  %v1094_v46 = vld [vmem:[#allocation3 + $0x18] sm:$0xff]  ;;  %v1096_v25 = vld [vmem:[#allocation3 + $0x68] sm:$0xff] }
 0x314   : > { %1109 = vperm.xlu0 %1308, %v1090_v38   ;;  %v1095_v24 = vld [vmem:[#allocation3 + $0x50] sm:$0xff]  ;;  %v1097_v55 = vld [vmem:[#allocation3 + $0x8] sm:$0xff]  ;;  %v1099_v60 = vld [vmem:[#allocation3 + $0x40] sm:$0xff] }
 0x315   : > { %v1098_v57 = vld [vmem:[#allocation3 + $0x48] sm:$0xff]  ;;  %v1100_v62 = vld [vmem:[#allocation3 + $0x20] sm:$0xff]  ;;  %v1101_v1 = vld [vmem:[#allocation3 + $0x10] sm:$0xff] }
 0x316   : > { %v1102_v3 = vld [vmem:[#allocation3 + $0x38] sm:$0xff]  ;;  %v1103_v11 = vld [vmem:[#allocation3 + $0x60] sm:$0xff]  ;;  %v1104_v63 = vld [vmem:[#allocation3 + $0x70] sm:$0xff] }
 0x317   : > { %v1105_v15 = vld [vmem:[#allocation3 + $0x78] sm:$0xff] }
 0x318   : > { %v1106_v17 = vld [vmem:[#allocation3 + $0x28] sm:$0xff] }
 0x386   : > { %v1110_v47 = vpop.permute.xlu0 %1109 }
 0x387   : > { %v1112_v48 = vadd.f32 %v1110_v47, %v1091_v43  ;;  %v1113_v54 = vadd.f32 %v1110_v47, %v1092_v44  ;;  %v1114_v9 = vadd.f32 %v1110_v47, %v1093_v45  ;;  %v1115_v56 = vadd.f32 %v1110_v47, %v1094_v46 }
 0x388   : > { %v1116_v59 = vadd.f32 %v1110_v47, %v1095_v24  ;;  %v1117_v61 = vadd.f32 %v1110_v47, %v1096_v25  ;;  %v1118_v0 = vadd.f32 %v1110_v47, %v1097_v55  ;;  %v1119_v2 = vadd.f32 %v1110_v47, %v1098_v57 }
 0x389   : > { %1128 = vst [vmem:[%s1689_s4] sm:$0xff] %v1112_v48  ;;  %v1120_v10 = vadd.f32 %v1110_v47, %v1099_v60  ;;  %v1121_v12 = vadd.f32 %v1110_v47, %v1100_v62  ;;  %v1122_v13 = vadd.f32 %v1110_v47, %v1101_v1  ;;  %v1123_v4 = vadd.f32 %v1110_v47, %v1102_v3 }
 0x38a   : > { %1129 = vst [vmem:[%s1689_s4 + $0x8] sm:$0xff] %v1113_v54  ;;  %v1124_v19 = vadd.f32 %v1110_v47, %v1103_v11  ;;  %v1125_v7 = vadd.f32 %v1110_v47, %v1104_v63  ;;  %v1126_v5 = vadd.f32 %v1110_v47, %v1105_v15  ;;  %v1127_v26 = vadd.f32 %v1110_v47, %v1106_v17 }
 0x38b   : > { %1130 = vst [vmem:[%s1689_s4 + $0x10] sm:$0xff] %v1114_v9 }
 0x38c   : > { %1131 = vst [vmem:[%s1689_s4 + $0x18] sm:$0xff] %v1115_v56 }
 0x38d   : > { %1132 = vst [vmem:[%s1689_s4 + $0x20] sm:$0xff] %v1116_v59 }
 0x38e   : > { %1133 = vst [vmem:[%s1689_s4 + $0x28] sm:$0xff] %v1117_v61 }
 0x38f   : > { %1134 = vst [vmem:[%s1689_s4 + $0x30] sm:$0xff] %v1118_v0 }
 0x390   : > { %1135 = vst [vmem:[%s1689_s4 + $0x38] sm:$0xff] %v1119_v2 }
 0x391   : > { %1136 = vst [vmem:[%s1689_s4 + $0x40] sm:$0xff] %v1120_v10 }
 0x392   : > { %1137 = vst [vmem:[%s1689_s4 + $0x48] sm:$0xff] %v1121_v12 }
 0x393   : > { %1138 = vst [vmem:[%s1689_s4 + $0x50] sm:$0xff] %v1122_v13 }
 0x394   : > { %1139 = vst [vmem:[%s1689_s4 + $0x58] sm:$0xff] %v1123_v4 }
 0x395   : > { %1140 = vst [vmem:[%s1689_s4 + $0x60] sm:$0xff] %v1124_v19 }
 0x396   : > { %1141 = vst [vmem:[%s1689_s4 + $0x68] sm:$0xff] %v1125_v7 }
 0x397   : > { %1142 = vst [vmem:[%s1689_s4 + $0x70] sm:$0xff] %v1126_v5 }
 0x398   : > { %1143 = vst [vmem:[%s1689_s4 + $0x78] sm:$0xff] %v1127_v26 }
 0x399 PF: > { %s14_s17 = sadd.s32 1, %s1331_s17   ;;  %s1690_s15 = smov %s1327_s16 }
 0x39a   : > { %p11_p7 = scmp.ge.s32.totalorder %s14_s17, 6   ;;  %s1691_s16 = smov %s1693_s18 }
 0x39c   :  { %13 = sbr.rel (!%p11_p7) target bundleno = 2 (0x2), region = 97 }

</bundles_post_ra>
